<compile_context>
chip_gen: v7x
topology: tpu7x:2x2x1
jax: 0.10.0
libtpu: 0.0.40
codegen_flags: <defaults>
</compile_context>

<pallas_src>
import functools

import jax
import jax.numpy as jnp
from jax import lax
from jax.experimental import pallas as pl
from jax.experimental.pallas import tpu as pltpu


def _round_up(x, k):
    return (x + k - 1) // k * k


def _point_upsample_kernel(parent_ref, xyzt_ref, feats_ref, out_ref, w_ref, *, mode):
    """Grid = (batch, n-tiles, c-tiles); the c axis is innermost ("arbitrary").

    parent_ref : (1, TN, 3)  parent-point tile
    xyzt_ref   : (1, 3, m)   all source points (resident across n/c tiles)
    feats_ref  : (1, TC, m)  source-feature channel tile (native dtype)
    out_ref    : (1, TC, TN) parent-feature tile
    w_ref      : (TN, m) f32 VMEM scratch with interpolation weights,
                 computed once per (batch, n-tile) on the first c-tile.
    """

    @pl.when(pl.program_id(2) == 0)
    def _build_weights():
        p = parent_ref[0].astype(jnp.float32)          # (TN, 3)
        xt = xyzt_ref[0].astype(jnp.float32)           # (3, m)
        tn = p.shape[0]
        m = xt.shape[1]

        # Squared distances via the MXU expansion ||p||^2 + ||x||^2 - 2 p.x^T.
        pmx = lax.dot_general(p, xt, (((1,), (0,)), ((), ())),
                              preferred_element_type=jnp.float32)        # (TN, m)
        p2 = jnp.sum(p * p, axis=-1, keepdims=True)                      # (TN, 1) lane red.
        x2 = jnp.sum(xt * xt, axis=0, keepdims=True)                     # (1, m) sublane red.
        d2 = jnp.maximum(p2 + x2 - 2.0 * pmx, 0.0)                       # (TN, m)

        col = lax.broadcasted_iota(jnp.int32, (tn, m), 1)
        big = jnp.float32(1e30)

        if mode == 'linear':
            # Fused 3-NN + weight accumulation (no persistent one-hot tensors).
            work = d2
            w_acc = jnp.zeros((tn, m), jnp.float32)
            norm = jnp.zeros((tn, 1), jnp.float32)
            for _ in range(3):
                dmin = jnp.min(work, axis=-1, keepdims=True)             # (TN, 1)
                # first-occurrence argmin (matches the CUDA three_nn tie-break)
                idx = jnp.min(jnp.where(work == dmin, col, jnp.int32(m)),
                              axis=-1, keepdims=True)                    # (TN, 1)
                sel = col == idx                                         # (TN, m)
                inv = pl.reciprocal(dmin + jnp.float32(1e-8), approx=True)
                w_acc = w_acc + sel.astype(jnp.float32) * inv
                norm = norm + inv
                work = jnp.where(sel, big, work)
            w_ref[...] = w_acc * pl.reciprocal(norm, approx=True)
        else:  # nearest
            dmin = jnp.min(d2, axis=-1, keepdims=True)
            idx = jnp.min(jnp.where(d2 == dmin, col, jnp.int32(m)),
                          axis=-1, keepdims=True)
            w_ref[...] = (col == idx).astype(jnp.float32)

    # Interpolate on the MXU: (TC, m) . (TN, m)^T -> (TC, TN).
    # feats stay in their native dtype; W is cast to match (bf16-friendly).
    f = feats_ref[0]                                                     # (TC, m)
    w = w_ref[...].astype(f.dtype)                                       # (TN, m)
    out = lax.dot_general(f, w, (((1,), (1,)), ((), ())),
                          preferred_element_type=jnp.float32)            # (TC, TN)
    out_ref[0] = out.astype(out_ref.dtype)


def point_upsample(xyz, parent_xyz, feats, mode='linear'):
    """xyz: (bs, m, 3), parent_xyz: (bs, n, 3), feats: (bs, c, m) -> (bs, c, n)."""
    assert mode in ('nearest', 'linear')
    bs, m, _ = xyz.shape
    _, n, _ = parent_xyz.shape
    c = feats.shape[1]
    if mode == 'linear':
        assert m >= 3, '[ERROR] linear point upsampling needs at least 3 source points'

    # --- tile sizing (glue) -------------------------------------------------
    # Parent-point tile: multiple of 128 (lane-dense output writeback), capped
    # at 256 so ~5-6 live (TN, m) f32 intermediates + the W scratch stay well
    # inside v7x's 64 MiB VMEM even for m ~ 4096.
    TN = min(256, _round_up(n, 128))
    n_pad = _round_up(n, TN)
    # Channel tile: multiple of 8 sublanes; only very large channel counts tile.
    c8 = _round_up(c, 8)
    TC = c8 if c8 <= 512 else 128
    c_pad = _round_up(c, TC)

    parent_p = parent_xyz
    if n_pad != n:
        parent_p = jnp.pad(parent_xyz, ((0, 0), (0, n_pad - n), (0, 0)))
    feats_p = feats
    if c_pad != c:
        feats_p = jnp.pad(feats, ((0, 0), (0, c_pad - c), (0, 0)))
    xyz_t = jnp.transpose(xyz, (0, 2, 1))   # (bs, 3, m): keeps ||x||^2 a sublane reduction

    kernel = functools.partial(_point_upsample_kernel, mode=mode)
    out_p = pl.pallas_call(
        kernel,
        out_shape=jax.ShapeDtypeStruct((bs, c_pad, n_pad), feats.dtype),
        grid=(bs, n_pad // TN, c_pad // TC),
        in_specs=[
            pl.BlockSpec((1, TN, 3), lambda b, i, j: (b, i, 0)),   # parent tile
            pl.BlockSpec((1, 3, m), lambda b, i, j: (b, 0, 0)),    # xyz_t, resident
            pl.BlockSpec((1, TC, m), lambda b, i, j: (b, j, 0)),   # feats channel tile
        ],
        out_specs=pl.BlockSpec((1, TC, TN), lambda b, i, j: (b, j, i)),
        scratch_shapes=[pltpu.VMEM((TN, m), jnp.float32)],         # cached W (geometry)
        compiler_params=pltpu.CompilerParams(
            dimension_semantics=("parallel", "parallel", "arbitrary"),
            vmem_limit_bytes=48 * 1024 * 1024,
        ),
    )(parent_p, xyz_t, feats_p)
    return out_p[:, :c, :n]


def point_upsample_ref(xyz, parent_xyz, feats, mode='linear'):
    """Pure-JAX reference mirroring the pointnet2 three_nn / three_interpolate path."""
    d2 = jnp.sum((parent_xyz[:, :, None, :] - xyz[:, None, :, :]) ** 2, axis=-1)  # (bs,n,m)
    m = xyz.shape[1]
    cols = jnp.arange(m)
    work = d2
    dmins, idxs = [], []
    for _ in range(3):
        dmin = jnp.min(work, axis=-1)
        idx = jnp.argmin(work, axis=-1)
        dmins.append(dmin)
        idxs.append(idx)
        work = jnp.where(cols[None, None, :] == idx[..., None], jnp.inf, work)
    dist = jnp.stack(dmins, -1)   # (bs, n, 3) squared distances (as in the CUDA kernel)
    idx = jnp.stack(idxs, -1)     # (bs, n, 3)
    if mode == 'linear':
        inv = 1.0 / (dist + 1e-8)
        w = inv / jnp.sum(inv, axis=-1, keepdims=True)                        # (bs, n, 3)
        gathered = jnp.take_along_axis(feats[:, :, None, :],
                                       idx[:, None, :, :], axis=-1)           # (bs, c, n, 3)
        return jnp.sum(gathered * w[:, None, :, :], axis=-1)                  # (bs, c, n)
    else:
        i0 = idx[..., 0]                                                       # (bs, n)
        return jnp.take_along_axis(feats, i0[:, None, :], axis=-1)             # (bs, c, n)


if __name__ == "__main__":
    key = jax.random.PRNGKey(0)

    def _quantize_coords(x):
        # Snap test coordinates to a coarse binary grid (multiples of 1/32, |x| < 4).
        # Both the kernel's MXU distance expansion and the reference's
        # subtract-then-square distance are then exact in f32 (and even under a
        # bf16 MXU pass), so the neighbor selection matches the reference
        # bit-for-bit; ties break identically (first occurrence) on both sides.
        return jnp.clip(jnp.round(x * 32.0) / 32.0, -3.96875, 3.96875)

    def _quantize_feats(x):
        # bf16-representable features -> the one-hot gather matmul is exact.
        return x.astype(jnp.bfloat16).astype(jnp.float32)

    configs = [
        dict(bs=2, c=4, m=8, n=16),      # tiny single-tile case
        dict(bs=2, c=20, m=64, n=300),   # exercises n-tiling + n/c padding + slicing
    ]
    for cfg in configs:
        bs, c, m, n = cfg['bs'], cfg['c'], cfg['m'], cfg['n']
        k1, k2, k3 = jax.random.split(jax.random.fold_in(key, n), 3)
        xyz = _quantize_coords(jax.random.normal(k1, (bs, m, 3), jnp.float32))
        parent_xyz = _quantize_coords(jax.random.normal(k2, (bs, n, 3), jnp.float32))
        feats = _quantize_feats(jax.random.normal(k3, (bs, c, m), jnp.float32))

        out_lin = jax.block_until_ready(point_upsample(xyz, parent_xyz, feats, mode='linear'))
        out_nn = jax.block_until_ready(point_upsample(xyz, parent_xyz, feats, mode='nearest'))
        assert out_lin.shape == (bs, c, n) and out_nn.shape == (bs, c, n)

        ref_lin = point_upsample_ref(xyz, parent_xyz, feats, mode='linear')
        ref_nn = point_upsample_ref(xyz, parent_xyz, feats, mode='nearest')
        # linear: weights use the approximate EUP reciprocal -> loose tolerance.
        assert jnp.allclose(out_lin, ref_lin, atol=5e-2, rtol=5e-2), 'linear mode mismatch'
        # nearest: exact one-hot gather.
        assert jnp.allclose(out_nn, ref_nn, atol=1e-5), 'nearest mode mismatch'

    print("KERNEL_OK")
</pallas_src>

<mosaic_0001>
module attributes {stable_mosaic.version = 11 : i64} {
  func.func @_point_upsample_kernel(%arg0: i32, %arg1: i32, %arg2: i32, %arg3: memref<1x128x3xf32, #tpu.memory_space<vmem>>, %arg4: memref<1x3x8xf32, #tpu.memory_space<vmem>>, %arg5: memref<1x8x8xf32, #tpu.memory_space<vmem>>, %arg6: memref<1x8x128xf32, #tpu.memory_space<vmem>>, %arg7: memref<128x8xf32, #tpu.memory_space<vmem>>) attributes {dimension_semantics = [#tpu.dimension_semantics<parallel>, #tpu.dimension_semantics<parallel>, #tpu.dimension_semantics<arbitrary>], iteration_bounds = array<i64: 2, 1, 1>, scalar_prefetch = 0 : i64, scratch_operands = 1 : i64, tpu.core_type = #tpu.core_type<tc>, window_params = [{transform_indices = @transform_0, window_bounds = array<i64: 1, 128, 3>}, {transform_indices = @transform_1, window_bounds = array<i64: 1, 3, 8>}, {transform_indices = @transform_2, window_bounds = array<i64: 1, 8, 8>}, {transform_indices = @transform_3, window_bounds = array<i64: 1, 8, 128>}]} {
    %c0_i32 = arith.constant 0 : i32
    %0 = arith.cmpi eq, %arg2, %c0_i32 : i32
    %1 = arith.extui %0 : i1 to i32
    %c0_i32_0 = arith.constant 0 : i32
    %2 = arith.cmpi ne, %1, %c0_i32_0 : i32
    scf.if %2 {
      %c0_8 = arith.constant 0 : index
      %c0_9 = arith.constant 0 : index
      %c0_10 = arith.constant 0 : index
      %10 = vector.load %arg3[%c0_8, %c0_9, %c0_10] : memref<1x128x3xf32, #tpu.memory_space<vmem>>, vector<1x128x3xf32>
      %11 = vector.shape_cast %10 : vector<1x128x3xf32> to vector<128x3xf32>
      %c0_11 = arith.constant 0 : index
      %c0_12 = arith.constant 0 : index
      %c0_13 = arith.constant 0 : index
      %12 = vector.load %arg4[%c0_11, %c0_12, %c0_13] : memref<1x3x8xf32, #tpu.memory_space<vmem>>, vector<1x3x8xf32>
      %13 = vector.shape_cast %12 : vector<1x3x8xf32> to vector<3x8xf32>
      %cst_14 = arith.constant dense<0.000000e+00> : vector<128x8xf32>
      %14 = tpu.matmul %11, %13, %cst_14 {dimension_numbers = #tpu.dot_dimension_numbers<[1], [0], [0], [1], [0, 0, 1, 1], [], []>} : vector<128x3xf32>, vector<3x8xf32>, vector<128x8xf32> -> vector<128x8xf32>
      %15 = arith.mulf %11, %11 : vector<128x3xf32>
      %cst_15 = arith.constant dense<0.000000e+00> : vector<128xf32>
      %16 = vector.multi_reduction <add>, %15, %cst_15 [1] : vector<128x3xf32> to vector<128xf32>
      %17 = vector.shape_cast %16 : vector<128xf32> to vector<128x1xf32>
      %18 = arith.mulf %13, %13 : vector<3x8xf32>
      %cst_16 = arith.constant dense<0.000000e+00> : vector<8xf32>
      %19 = vector.multi_reduction <add>, %18, %cst_16 [0] : vector<3x8xf32> to vector<8xf32>
      %20 = vector.shape_cast %19 : vector<8xf32> to vector<1x8xf32>
      %21 = vector.broadcast %17 : vector<128x1xf32> to vector<128x8xf32>
      %22 = vector.broadcast %20 : vector<1x8xf32> to vector<128x8xf32>
      %23 = arith.addf %21, %22 : vector<128x8xf32>
      %cst_17 = arith.constant 2.000000e+00 : f32
      %24 = vector.broadcast %cst_17 : f32 to vector<128x8xf32>
      %25 = arith.mulf %24, %14 : vector<128x8xf32>
      %26 = arith.subf %23, %25 : vector<128x8xf32>
      %cst_18 = arith.constant 0.000000e+00 : f32
      %27 = vector.broadcast %cst_18 : f32 to vector<128x8xf32>
      %28 = arith.maximumf %26, %27 : vector<128x8xf32>
      %29 = tpu.iota {dimensions = array<i32: 1>} : vector<128x8xi32>
      %cst_19 = arith.constant 0.000000e+00 : f32
      %30 = vector.broadcast %cst_19 : f32 to vector<128x8xf32>
      %cst_20 = arith.constant 0.000000e+00 : f32
      %31 = vector.broadcast %cst_20 : f32 to vector<128x1xf32>
      %cst_21 = arith.constant dense<0x7F800000> : vector<128xf32>
      %32 = vector.multi_reduction <minimumf>, %28, %cst_21 [1] : vector<128x8xf32> to vector<128xf32>
      %33 = vector.shape_cast %32 : vector<128xf32> to vector<128x1xf32>
      %34 = vector.broadcast %33 : vector<128x1xf32> to vector<128x8xf32>
      %35 = arith.cmpf oeq, %28, %34 : vector<128x8xf32>
      %c8_i32 = arith.constant 8 : i32
      %36 = vector.broadcast %c8_i32 : i32 to vector<128x8xi32>
      %37 = arith.select %35, %29, %36 : vector<128x8xi1>, vector<128x8xi32>
      %cst_22 = arith.constant dense<2147483647> : vector<128xi32>
      %38 = vector.multi_reduction <minsi>, %37, %cst_22 [1] : vector<128x8xi32> to vector<128xi32>
      %39 = vector.shape_cast %38 : vector<128xi32> to vector<128x1xi32>
      %40 = vector.broadcast %39 : vector<128x1xi32> to vector<128x8xi32>
      %41 = arith.cmpi eq, %29, %40 : vector<128x8xi32>
      %cst_23 = arith.constant 9.99999993E-9 : f32
      %42 = vector.broadcast %cst_23 : f32 to vector<128x1xf32>
      %43 = arith.addf %33, %42 : vector<128x1xf32>
      %44 = tpu.reciprocal %43 {approx = true} : vector<128x1xf32> -> vector<128x1xf32>
      %45 = arith.extui %41 : vector<128x8xi1> to vector<128x8xi32>
      %46 = arith.sitofp %45 : vector<128x8xi32> to vector<128x8xf32>
      %47 = vector.broadcast %44 : vector<128x1xf32> to vector<128x8xf32>
      %48 = arith.mulf %46, %47 : vector<128x8xf32>
      %49 = arith.addf %30, %48 : vector<128x8xf32>
      %50 = arith.addf %31, %44 : vector<128x1xf32>
      %cst_24 = arith.constant 1.000000e+30 : f32
      %51 = vector.broadcast %cst_24 : f32 to vector<128x8xf32>
      %52 = arith.select %41, %51, %28 : vector<128x8xi1>, vector<128x8xf32>
      %cst_25 = arith.constant dense<0x7F800000> : vector<128xf32>
      %53 = vector.multi_reduction <minimumf>, %52, %cst_25 [1] : vector<128x8xf32> to vector<128xf32>
      %54 = vector.shape_cast %53 : vector<128xf32> to vector<128x1xf32>
      %55 = vector.broadcast %54 : vector<128x1xf32> to vector<128x8xf32>
      %56 = arith.cmpf oeq, %52, %55 : vector<128x8xf32>
      %c8_i32_26 = arith.constant 8 : i32
      %57 = vector.broadcast %c8_i32_26 : i32 to vector<128x8xi32>
      %58 = arith.select %56, %29, %57 : vector<128x8xi1>, vector<128x8xi32>
      %cst_27 = arith.constant dense<2147483647> : vector<128xi32>
      %59 = vector.multi_reduction <minsi>, %58, %cst_27 [1] : vector<128x8xi32> to vector<128xi32>
      %60 = vector.shape_cast %59 : vector<128xi32> to vector<128x1xi32>
      %61 = vector.broadcast %60 : vector<128x1xi32> to vector<128x8xi32>
      %62 = arith.cmpi eq, %29, %61 : vector<128x8xi32>
      %cst_28 = arith.constant 9.99999993E-9 : f32
      %63 = vector.broadcast %cst_28 : f32 to vector<128x1xf32>
      %64 = arith.addf %54, %63 : vector<128x1xf32>
      %65 = tpu.reciprocal %64 {approx = true} : vector<128x1xf32> -> vector<128x1xf32>
      %66 = arith.extui %62 : vector<128x8xi1> to vector<128x8xi32>
      %67 = arith.sitofp %66 : vector<128x8xi32> to vector<128x8xf32>
      %68 = vector.broadcast %65 : vector<128x1xf32> to vector<128x8xf32>
      %69 = arith.mulf %67, %68 : vector<128x8xf32>
      %70 = arith.addf %49, %69 : vector<128x8xf32>
      %71 = arith.addf %50, %65 : vector<128x1xf32>
      %cst_29 = arith.constant 1.000000e+30 : f32
      %72 = vector.broadcast %cst_29 : f32 to vector<128x8xf32>
      %73 = arith.select %62, %72, %52 : vector<128x8xi1>, vector<128x8xf32>
      %cst_30 = arith.constant dense<0x7F800000> : vector<128xf32>
      %74 = vector.multi_reduction <minimumf>, %73, %cst_30 [1] : vector<128x8xf32> to vector<128xf32>
      %75 = vector.shape_cast %74 : vector<128xf32> to vector<128x1xf32>
      %76 = vector.broadcast %75 : vector<128x1xf32> to vector<128x8xf32>
      %77 = arith.cmpf oeq, %73, %76 : vector<128x8xf32>
      %c8_i32_31 = arith.constant 8 : i32
      %78 = vector.broadcast %c8_i32_31 : i32 to vector<128x8xi32>
      %79 = arith.select %77, %29, %78 : vector<128x8xi1>, vector<128x8xi32>
      %cst_32 = arith.constant dense<2147483647> : vector<128xi32>
      %80 = vector.multi_reduction <minsi>, %79, %cst_32 [1] : vector<128x8xi32> to vector<128xi32>
      %81 = vector.shape_cast %80 : vector<128xi32> to vector<128x1xi32>
      %82 = vector.broadcast %81 : vector<128x1xi32> to vector<128x8xi32>
      %83 = arith.cmpi eq, %29, %82 : vector<128x8xi32>
      %cst_33 = arith.constant 9.99999993E-9 : f32
      %84 = vector.broadcast %cst_33 : f32 to vector<128x1xf32>
      %85 = arith.addf %75, %84 : vector<128x1xf32>
      %86 = tpu.reciprocal %85 {approx = true} : vector<128x1xf32> -> vector<128x1xf32>
      %87 = arith.extui %83 : vector<128x8xi1> to vector<128x8xi32>
      %88 = arith.sitofp %87 : vector<128x8xi32> to vector<128x8xf32>
      %89 = vector.broadcast %86 : vector<128x1xf32> to vector<128x8xf32>
      %90 = arith.mulf %88, %89 : vector<128x8xf32>
      %91 = arith.addf %70, %90 : vector<128x8xf32>
      %92 = arith.addf %71, %86 : vector<128x1xf32>
      %93 = tpu.reciprocal %92 {approx = true} : vector<128x1xf32> -> vector<128x1xf32>
      %94 = vector.broadcast %93 : vector<128x1xf32> to vector<128x8xf32>
      %95 = arith.mulf %91, %94 : vector<128x8xf32>
      %c0_34 = arith.constant 0 : index
      %c0_35 = arith.constant 0 : index
      %96 = vector.load %arg7[%c0_34, %c0_35] : memref<128x8xf32, #tpu.memory_space<vmem>>, vector<128x8xf32>
      tpu.vector_store %arg7[%c0_34, %c0_35], %95 {strides = array<i32>} : memref<128x8xf32, #tpu.memory_space<vmem>>, vector<128x8xf32>,
    } else {
    }
    %c0 = arith.constant 0 : index
    %c0_1 = arith.constant 0 : index
    %c0_2 = arith.constant 0 : index
    %3 = vector.load %arg5[%c0, %c0_1, %c0_2] : memref<1x8x8xf32, #tpu.memory_space<vmem>>, vector<1x8x8xf32>
    %4 = vector.shape_cast %3 : vector<1x8x8xf32> to vector<8x8xf32>
    %c0_3 = arith.constant 0 : index
    %c0_4 = arith.constant 0 : index
    %5 = vector.load %arg7[%c0_3, %c0_4] : memref<128x8xf32, #tpu.memory_space<vmem>>, vector<128x8xf32>
    %cst = arith.constant dense<0.000000e+00> : vector<8x128xf32>
    %6 = tpu.matmul %4, %5, %cst {dimension_numbers = #tpu.dot_dimension_numbers<[1], [1], [0], [0], [0, 0, 1, 0], [], []>} : vector<8x8xf32>, vector<128x8xf32>, vector<8x128xf32> -> vector<8x128xf32>
    %c0_5 = arith.constant 0 : index
    %c0_6 = arith.constant 0 : index
    %c0_7 = arith.constant 0 : index
    %7 = vector.load %arg6[%c0_5, %c0_6, %c0_7] : memref<1x8x128xf32, #tpu.memory_space<vmem>>, vector<1x8x128xf32>
    %8 = vector.shape_cast %7 : vector<1x8x128xf32> to vector<8x128xf32>
    %9 = vector.shape_cast %6 : vector<8x128xf32> to vector<1x8x128xf32>
    tpu.vector_store %arg6[%c0_5, %c0_6, %c0_7], %9 {strides = array<i32>} : memref<1x8x128xf32, #tpu.memory_space<vmem>>, vector<1x8x128xf32>,
    return
  }
  func.func @transform_0(%arg0: i32, %arg1: i32, %arg2: i32) -> (i32, i32, i32) {
    %c0_i32 = arith.constant 0 : i32
    %c0_i32_0 = arith.constant 0 : i32
    return %arg0, %arg1, %c0_i32 : i32, i32, i32
  }
  func.func @transform_1(%arg0: i32, %arg1: i32, %arg2: i32) -> (i32, i32, i32) {
    %c0_i32 = arith.constant 0 : i32
    %c0_i32_0 = arith.constant 0 : i32
    %c0_i32_1 = arith.constant 0 : i32
    return %arg0, %c0_i32, %c0_i32_0 : i32, i32, i32
  }
  func.func @transform_2(%arg0: i32, %arg1: i32, %arg2: i32) -> (i32, i32, i32) {
    %c0_i32 = arith.constant 0 : i32
    %c0_i32_0 = arith.constant 0 : i32
    return %arg0, %arg2, %c0_i32 : i32, i32, i32
  }
  func.func @transform_3(%arg0: i32, %arg1: i32, %arg2: i32) -> (i32, i32, i32) {
    %c0_i32 = arith.constant 0 : i32
    return %arg0, %arg2, %arg1 : i32, i32, i32
  }
}

</mosaic_0001>

<bundles_post_ra>
// kernel: tpu_custom_call.1
= control target key start
LH: loop header
LB: loop body
LE: loop exit
PB: predicated region body
PF: predicated region fallthrough
CT: control target
= control target key end

     0   :  { %8 = vsyncpa [#allocation4], 0  ;;  %s4714_s0 = inlined_call_operand.vmem [shape: f32[2,128,3], index: 0, kind: input, shape index: {}]   ;;  %s4715_s1 = inlined_call_operand.vmem [shape: f32[2,3,8], index: 1, kind: input, shape index: {}]   ;;  %s4716_s2 = inlined_call_operand.vmem [shape: f32[2,8,8], index: 2, kind: input, shape index: {}]   ;;  %s4717_s3 = inlined_call_operand.hbm [shape: f32[2,8,128], index: 3, kind: output, shape index: {}]  }
   0x1   :  { %10 = vsyncpa [#allocation4 + $0x1], 0  ;;  %s2811_s12 = smov 0   ;;  %s2813_s13 = smov 0  }
   0x2   :  { %s2815_s14 = smov 0   ;;  %s2817_s15 = smov 0  }
   0x3   :  { %s2819_s16 = smov 0   ;;  %s2821_s17 = smov 0  }
   0x4 LB: > { %s2297_s18 = sadd.s32 4294967295, %s2785_s17   ;;  %s2298_s19 = sadd.s32 4294967294, %s2785_s17   ;;  %s2785_s17 = sphi %s2821_s17, %s16_s17   ;;  %s2781_s16 = sphi %s2819_s16, %s5021_s16   ;;  %s2777_s15 = sphi %s2817_s15, %s5020_s15   ;;  %s2773_s14 = sphi %s2815_s14, %s5019_s14   ;;  %s2769_s13 = sphi %s2813_s13, %s5018_s13   ;;  %s2765_s12 = sphi %s2811_s12, %s5017_s12  }
   0x5   : > { %s35_s20 = sadd.s32 1, %s2781_s16  ;;  %s128_s21 = sadd.s32 1, %s2773_s14 }
   0x6   : > { %p37_p0 = scmp.ge.s32.totalorder %s35_s20, 2  ;;  %p138_p1 = scmp.ne.s32.totalorder %s2773_s14, %s2769_s13 }
   0x7   : > { %p139_p2 = scmp.eq.s32.totalorder %s2297_s18, 1  ;;  %p144_p3 = scmp.ne.s32.totalorder %s2769_s13, %s2765_s12 }
   0x8   : > { %s5023_s20 = smov (%p37_p0, %s35_s20), 0  ;;  %p145_p5 = scmp.eq.s32.totalorder %s2298_s19, 1 }
   0x9   : > { %p2851_p4 = por %p139_p2, %p138_p1  ;;  %s121_s23 = ssub.s32 %s2781_s16, %s5023_s20 }
   0xa   : > { %p2301_p6 = scmp.ge.s32.totalorder %s2785_s17, 1  ;;  %p126_p7 = scmp.eq.s32.totalorder %s121_s23, 0 }
   0xb   : > { %p2858_p8 = por %p145_p5, %p144_p3  ;;  %p193_p9 = scmp.lt.s32.totalorder %s2785_s17, 3 }
   0xc   : > { %s2864_s25 = scalar_select %p126_p7, %s2773_s14, %s128_s21  }
   0xd   : > { %p194_p10 = pnand %p2301_p6, %p193_p9 }
   0xf   : > { %197 = sbr.rel (%p194_p10) target bundleno = 1882 (0x75a), region = 32 }
  0x16   : > { %p233_p11 = scmp.lt.s32.totalorder %s2777_s15, 1  ;;  %vm323_vm0 = vcmask 1042432   ;;  %vm274_vm1 = vcmask 23552   ;;  %vm537_vm2 = vcmask 59392   ;;  %vm4765_vm3 = vcmask 64512   ;;  %s229_s18 = sand.u32 1, %s2769_s13  }
  0x17   : > { %s2302_s19 = sshll.u32 %s229_s18, 3  ;;  %s2177_s30 = scalar_lea.sflag [#allocation4], %s229_s18 }
  0x18   : > { %s2868_s26 = scalar_select %p233_p11, %s2777_s15, 1 }
  0x19   : > { %s231_s21 = scalar_lea.vmem [#allocation3], %s2302_s19 }
  0x1a   : > { %s2393_s27 = sshll.u32 %s2868_s26, 7  ;;  %s2305_s28 = sshll.u32 %s2868_s26, 2 }
  0x1b   : > { %s2875_s4 = scalar_lea.vmem %s4714_s0, %s2393_s27  ;;  %s245_s7 = scalar_lea.vmem %s4715_s1, %s2305_s28 }
  0x1c   : > { %v2880_v0 = vld [vmem:[%s245_s7] sm:$0x7]  ;;  %v258_v2 = vld [vmem:[%s2875_s4 + $0x8] sm:$0xff]  ;;  %v259_v4 = vld [vmem:[%s2875_s4 + $0x10] sm:$0xff]  ;;  %s2306_s8 = sshll.u32 %s2868_s26, 3  ;;  %s2192_s23 = sshll.u32 %s231_s21, 4  ;;  %s4664_s23 = int_to_ptr.vmem [resolvable:$true] %s2192_s23 }
  0x1d   : > { %v257_v1 = vld [vmem:[%s2875_s4] sm:$0xff]  ;;  %2428 = vmatprep.subr.msk.mxu0 %vm323_vm0, %v2880_v0  ;;  %v260_v5 = vld [vmem:[%s2875_s4 + $0x18] sm:$0xff]  ;;  %v473_v6 = vmul.f32 %v258_v2, %v258_v2  ;;  %v474_v7 = vmul.f32 %v259_v4, %v259_v4  ;;  %v262_v12 = vld [vmem:[%s2875_s4 + $0x28] sm:$0xff]  ;;  %v536_v49 = vmul.f32 %v2880_v0, %v2880_v0  ;;  %s252_s11 = scalar_lea.vmem %s4716_s2, %s2306_s8  ;;  %s2390_s27 = sshll.u32 %s2777_s15, 7 }
  0x1e   : > { %2430 = vmatprep.mubr.msk.f32.mxu0 %vm274_vm1, %v257_v1  ;;  %v472_v3 = vmul.f32 %v257_v1, %v257_v1  ;;  %2429 = vmatpush3.msk.msra.mxu0 %vm323_vm0, %v2880_v0  ;;  %v475_v8 = vmul.f32 %v260_v5, %v260_v5  ;;  %v261_v10 = vld [vmem:[%s2875_s4 + $0x20] sm:$0xff]  ;;  %v477_v16 = vmul.f32 %v262_v12, %v262_v12  ;;  %v263_v17 = vld [vmem:[%s2875_s4 + $0x30] sm:$0xff]  ;;  %v264_v18 = vld [vmem:[%s2875_s4 + $0x38] sm:$0xff]  ;;  %s4669_s29 = scalar_lea.hbm %s4717_s3, %s2390_s27  ;;  %s2790_s15 = smov [#allocation3]  }
  0x1f   : > { %2431 = vmatmul.mubr.msk.f32.vlgmr.msra.gmra.mrb[0].mxu0 %vm274_vm1, %v258_v2  ;;  %v494_v11 = vsel %vm274_vm1, %v474_v7, 0.0  ;;  %v491_v13 = vsel %vm274_vm1, %v473_v6, 0.0  ;;  %v476_v14 = vmul.f32 %v261_v10, %v261_v10  ;;  %v478_v20 = vmul.f32 %v263_v17, %v263_v17  ;;  %v265_v23 = vld [vmem:[%s2875_s4 + $0x40] sm:$0xff]  ;;  %v266_v24 = vld [vmem:[%s2875_s4 + $0x48] sm:$0xff]  ;;  %v267_v29 = vld [vmem:[%s2875_s4 + $0x50] sm:$0xff]  ;;  %s2711_s5 = sshll.u32 %s2790_s15, 4  ;;  %s2712_s5 = int_to_ptr.vmem [resolvable:$false] %s2711_s5 }
  0x20   : > { %v488_v9 = vsel %vm274_vm1, %v472_v3, 0.0  ;;  %2433 = vmatprep.mubr.msk.f32.mxu0 %vm274_vm1, %v259_v4  ;;  %495 = vadd.xlane.f32.xlu1 %v494_v11  ;;  %v497_v15 = vsel %vm274_vm1, %v475_v8, 0.0  ;;  %v503_v21 = vsel %vm274_vm1, %v477_v16, 0.0  ;;  %v479_v22 = vmul.f32 %v264_v18, %v264_v18  ;;  %v268_v30 = vld [vmem:[%s2875_s4 + $0x58] sm:$0xff]  ;;  %v269_v35 = vld [vmem:[%s2875_s4 + $0x60] sm:$0xff]  ;;  %v270_v36 = vld [vmem:[%s2875_s4 + $0x68] sm:$0xff]  ;;  %p2714_p1 = scmp.lt.s32.totalorder %s4664_s23, %s2712_s5 }
  0x21   : > { %489 = vadd.xlane.f32.xlu0 %v488_v9  ;;  %v500_v19 = vsel %vm274_vm1, %v476_v14, 0.0  ;;  %v506_v25 = vsel %vm274_vm1, %v478_v20, 0.0  ;;  %v480_v26 = vmul.f32 %v265_v23, %v265_v23  ;;  %v481_v28 = vmul.f32 %v266_v24, %v266_v24  ;;  %v271_v41 = vld [vmem:[%s2875_s4 + $0x70] sm:$0xff]  ;;  %v272_v42 = vld [vmem:[%s2875_s4 + $0x78] sm:$0xff]  ;;  %s2707_s4 = scalar_lea.vmem %s4664_s23, 128  ;;  %s2713_s6 = scalar_lea.vmem %s2712_s5, 256 }
  0x22   : > { %v509_v27 = vsel %vm274_vm1, %v479_v22, 0.0  ;;  %v482_v32 = vmul.f32 %v267_v29, %v267_v29  ;;  %v483_v34 = vmul.f32 %v268_v30, %v268_v30  ;;  %v484_v38 = vmul.f32 %v269_v35, %v269_v35  ;;  %p2708_p12 = scmp.ne.s32.totalorder %s4664_s23, %s2707_s4  ;;  %p2715_p2 = scmp.lt.s32.totalorder %s2713_s6, %s2707_s4 }
  0x23   : > { %2434 = vmatmul.mubr.msk.f32.gmra.mrb[2].mxu0 %vm274_vm1, %v260_v5  ;;  %v512_v31 = vsel %vm274_vm1, %v480_v26, 0.0  ;;  %v515_v33 = vsel %vm274_vm1, %v481_v28, 0.0  ;;  %v485_v40 = vmul.f32 %v270_v36, %v270_v36  ;;  %v486_v44 = vmul.f32 %v271_v41, %v271_v41 }
  0x24   : > { %2436 = vmatprep.mubr.msk.f32.mxu0 %vm274_vm1, %v261_v10  ;;  %498 = vadd.xlane.f32.xlu1 %v497_v15  ;;  %v518_v37 = vsel %vm274_vm1, %v482_v32, 0.0  ;;  %v521_v39 = vsel %vm274_vm1, %v483_v34, 0.0  ;;  %v524_v43 = vsel %vm274_vm1, %v484_v38, 0.0  ;;  %v487_v46 = vmul.f32 %v272_v42, %v272_v42  ;;  %p2709_p13 = pnand %p2708_p12, %p2851_p4  ;;  %p2716_p3 = por %p2715_p2, %p2714_p1 }
  0x25   : > { %492 = vadd.xlane.f32.xlu0 %v491_v13  ;;  %v527_v45 = vsel %vm274_vm1, %v485_v40, 0.0  ;;  %v530_v47 = vsel %vm274_vm1, %v486_v44, 0.0  ;;  %v538_v50 = vsel %vm537_vm2, %v536_v49, 0.0 }
  0x26   : > { %v533_v48 = vsel %vm274_vm1, %v487_v46, 0.0  ;;  %v539_v51 = vrot.slane %v538_v50, 4  ;;  %p2710_p0 = pneg %p2709_p13 }
  0x27   : > { %2437 = vmatmul.mubr.msk.f32.gmra.mrb[4].mxu0 %vm274_vm1, %v262_v12 }
  0x28   : > { %2439 = vmatprep.mubr.msk.f32.mxu0 %vm274_vm1, %v263_v17  ;;  %504 = vadd.xlane.f32.xlu1 %v503_v21  ;;  %v540_v52 = vadd.f32 %v539_v51, %v538_v50  ;;  %p2717_p5 = pnand %p2716_p3, %p2710_p0 }
  0x29   : > { %501 = vadd.xlane.f32.xlu0 %v500_v19 }
  0x2a   : > { %v541_v54 = vrot.slane %v540_v52, 2 }
  0x2b   : > { %2440 = vmatmul.mubr.msk.f32.gmra.mrb[6].mxu0 %vm274_vm1, %v264_v18 }
  0x2c   : > { %2442 = vmatprep.mubr.msk.f32.mxu0 %vm274_vm1, %v265_v23  ;;  %510 = vadd.xlane.f32.xlu1 %v509_v27  ;;  %v542_v57 = vadd.f32 %v541_v54, %v540_v52 }
  0x2d   : > { %507 = vadd.xlane.f32.xlu0 %v506_v25 }
  0x2e   : > { %v543_v59 = vrot.slane %v542_v57, 1 }
  0x2f   : > { %2443 = vmatmul.mubr.msk.f32.gmra.mrb[8].mxu0 %vm274_vm1, %v266_v24 }
  0x30   : > { %2445 = vmatprep.mubr.msk.f32.mxu0 %vm274_vm1, %v267_v29  ;;  %516 = vadd.xlane.f32.xlu1 %v515_v33  ;;  %v2934_v62 = vadd.f32 %v543_v59, %v542_v57 }
  0x31   : > { %513 = vadd.xlane.f32.xlu0 %v512_v31 }
  0x33   : > { %2446 = vmatmul.mubr.msk.f32.gmra.mrb[10].mxu0 %vm274_vm1, %v268_v30 }
  0x34   : > { %2448 = vmatprep.mubr.msk.f32.mxu0 %vm274_vm1, %v269_v35  ;;  %522 = vadd.xlane.f32.xlu1 %v521_v39 }
  0x35   : > { %519 = vadd.xlane.f32.xlu0 %v518_v37 }
  0x37   : > { %2449 = vmatmul.mubr.msk.f32.gmra.mrb[12].mxu0 %vm274_vm1, %v270_v36 }
  0x38   : > { %2451 = vmatprep.mubr.msk.f32.mxu0 %vm274_vm1, %v271_v41  ;;  %528 = vadd.xlane.f32.xlu1 %v527_v45 }
  0x39   : > { %525 = vadd.xlane.f32.xlu0 %v524_v43 }
  0x3b   : > { %2452 = vmatmul.mubr.msk.f32.gmra.mrb[14].mxu0 %vm274_vm1, %v272_v42 }
  0x3c   : > { %534 = vadd.xlane.f32.xlu1 %v533_v48 }
  0x3d   : > { %531 = vadd.xlane.f32.xlu0 %v530_v47 }
  0xad   : > { %v496_v53 = vpop.xlane.xlu1 %495 }
  0xae   : > { %v490_v55 = vpop.xlane.xlu0 %489  ;;  %v547_v9 = vadd.f32 %v2934_v62, %v496_v53 }
  0xaf   : > { %v545_v5 = vadd.f32 %v2934_v62, %v490_v55 }
  0xb1   : > { %v499_v56 = vpop.xlane.xlu1 %498 }
  0xb2   : > { %v493_v58 = vpop.xlane.xlu0 %492  ;;  %v548_v8 = vadd.f32 %v2934_v62, %v499_v56 }
  0xb3   : > { %v546_v63 = vadd.f32 %v2934_v62, %v493_v58 }
  0xb5   : > { %v505_v60 = vpop.xlane.xlu1 %504 }
  0xb6   : > { %v502_v61 = vpop.xlane.xlu0 %501  ;;  %v550_v19 = vadd.f32 %v2934_v62, %v505_v60 }
  0xb7   : > { %v549_v24 = vadd.f32 %v2934_v62, %v502_v61 }
  0xb9   : > { %v511_v2 = vpop.xlane.xlu1 %510 }
  0xba   : > { %v508_v4 = vpop.xlane.xlu0 %507  ;;  %v552_v32 = vadd.f32 %v2934_v62, %v511_v2 }
  0xbb   : > { %v551_v36 = vadd.f32 %v2934_v62, %v508_v4 }
  0xbd   : > { %v517_v17 = vpop.xlane.xlu1 %516 }
  0xbe   : > { %v514_v21 = vpop.xlane.xlu0 %513  ;;  %v554_v46 = vadd.f32 %v2934_v62, %v517_v17 }
  0xbf   : > { %v553_v50 = vadd.f32 %v2934_v62, %v514_v21 }
  0xc1   : > { %v523_v38 = vpop.xlane.xlu1 %522 }
  0xc2   : > { %v520_v42 = vpop.xlane.xlu0 %519  ;;  %v556_v59 = vadd.f32 %v2934_v62, %v523_v38 }
  0xc3   : > { %v555_v2 = vadd.f32 %v2934_v62, %v520_v42 }
  0xc5   : > { %v529_v57 = vpop.xlane.xlu1 %528 }
  0xc6   : > { %v526_v61 = vpop.xlane.xlu0 %525 }
  0xc9   : > { %v535_v17 = vpop.xlane.xlu1 %534 }
  0xca   : > { %v532_v21 = vpop.xlane.xlu0 %531 }
  0xf2   : > { %v2432_v1 = vpop.f32.mrb[0].mxu0 }
  0xf3   : > { %v562_v0 = vmul.f32 2.0, %v2432_v1  ;;  %v393_v3 = vpop.f32.mrb[1].mxu0 }
  0xf4   : > { %v561_v6 = vmul.f32 2.0, %v393_v3 }
  0xf5   : > { %v578_v7 = vsub.f32 %v546_v63, %v562_v0 }
  0xf6   : > { %v577_v10 = vsub.f32 %v545_v5, %v561_v6  ;;  %v2435_v11 = vpop.f32.mrb[2].mxu0 }
  0xf7   : > { %v2940_v12 = vmax.f32 %v578_v7, 0.0  ;;  %v564_v13 = vmul.f32 2.0, %v2435_v11  ;;  %v403_v14 = vpop.f32.mrb[3].mxu0 }
  0xf8   : > { %v2942_v15 = vmax.f32 %v577_v10, 0.0  ;;  %v563_v16 = vmul.f32 2.0, %v403_v14  ;;  %v557_v14 = vadd.f32 %v2934_v62, %v526_v61 }
  0xf9   : > { %v580_v18 = vsub.f32 %v548_v8, %v564_v13  ;;  %v615_v20 = vsel %vm4765_vm3, %v2940_v12, inf }
  0xfa   : > { %v579_v22 = vsub.f32 %v547_v9, %v563_v16  ;;  %616 = vmin.xlane.f32.xlu1 %v615_v20  ;;  %v2438_v23 = vpop.f32.mrb[4].mxu0  ;;  %v612_v25 = vsel %vm4765_vm3, %v2942_v15, inf  ;;  %v558_v9 = vadd.f32 %v2934_v62, %v529_v57 }
  0xfb   : > { %v2950_v26 = vmax.f32 %v580_v18, 0.0  ;;  %v566_v27 = vmul.f32 2.0, %v2438_v23  ;;  %613 = vmin.xlane.f32.xlu0 %v612_v25  ;;  %v413_v28 = vpop.f32.mrb[5].mxu0  ;;  %v560_v25 = vadd.f32 %v2934_v62, %v535_v17 }
  0xfc   : > { %v2952_v29 = vmax.f32 %v579_v22, 0.0  ;;  %v565_v30 = vmul.f32 2.0, %v413_v28 }
  0xfd   : > { %v582_v31 = vsub.f32 %v550_v19, %v566_v27  ;;  %v621_v33 = vsel %vm4765_vm3, %v2950_v26, inf }
  0xfe   : > { %v581_v34 = vsub.f32 %v549_v24, %v565_v30  ;;  %622 = vmin.xlane.f32.xlu1 %v621_v33  ;;  %v2441_v35 = vpop.f32.mrb[6].mxu0  ;;  %v618_v37 = vsel %vm4765_vm3, %v2952_v29, inf }
  0xff   : > { %v2960_v39 = vmax.f32 %v582_v31, 0.0  ;;  %v568_v40 = vmul.f32 2.0, %v2441_v35  ;;  %619 = vmin.xlane.f32.xlu0 %v618_v37  ;;  %v423_v41 = vpop.f32.mrb[7].mxu0  ;;  %v559_v31 = vadd.f32 %v2934_v62, %v532_v21 }
 0x100   : > { %v2962_v43 = vmax.f32 %v581_v34, 0.0  ;;  %v567_v44 = vmul.f32 2.0, %v423_v41 }
 0x101   : > { %v584_v45 = vsub.f32 %v552_v32, %v568_v40  ;;  %v627_v47 = vsel %vm4765_vm3, %v2960_v39, inf }
 0x102   : > { %v583_v48 = vsub.f32 %v551_v36, %v567_v44  ;;  %628 = vmin.xlane.f32.xlu1 %v627_v47  ;;  %v2444_v49 = vpop.f32.mrb[8].mxu0  ;;  %v624_v51 = vsel %vm4765_vm3, %v2962_v43, inf  ;;  %v609_v47 = vlaneseq }
 0x103   : > { %v2970_v52 = vmax.f32 %v584_v45, 0.0  ;;  %v570_v53 = vmul.f32 2.0, %v2444_v49  ;;  %625 = vmin.xlane.f32.xlu0 %v624_v51  ;;  %v433_v54 = vpop.f32.mrb[9].mxu0 }
 0x104   : > { %v2972_v55 = vmax.f32 %v583_v48, 0.0  ;;  %v569_v56 = vmul.f32 2.0, %v433_v54  ;;  %v3016_v48 = vand.u32 127, %v609_v47 }
 0x105   : > { %v586_v58 = vsub.f32 %v554_v46, %v570_v53  ;;  %v633_v60 = vsel %vm4765_vm3, %v2970_v52, inf }
 0x106   : > { %v585_v63 = vsub.f32 %v553_v50, %v569_v56  ;;  %634 = vmin.xlane.f32.xlu1 %v633_v60  ;;  %v2447_v1 = vpop.f32.mrb[10].mxu0  ;;  %v630_v0 = vsel %vm4765_vm3, %v2972_v55, inf }
 0x107   : > { %v2980_v3 = vmax.f32 %v586_v58, 0.0  ;;  %v572_v4 = vmul.f32 2.0, %v2447_v1  ;;  %631 = vmin.xlane.f32.xlu0 %v630_v0  ;;  %v443_v5 = vpop.f32.mrb[11].mxu0 }
 0x108   : > { %v2982_v6 = vmax.f32 %v585_v63, 0.0  ;;  %v571_v7 = vmul.f32 2.0, %v443_v5 }
 0x109   : > { %v588_v8 = vsub.f32 %v556_v59, %v572_v4  ;;  %v639_v10 = vsel %vm4765_vm3, %v2980_v3, inf }
 0x10a   : > { %v587_v11 = vsub.f32 %v555_v2, %v571_v7  ;;  %640 = vmin.xlane.f32.xlu1 %v639_v10  ;;  %v2450_v13 = vpop.f32.mrb[12].mxu0  ;;  %v636_v16 = vsel %vm4765_vm3, %v2982_v6, inf }
 0x10b   : > { %v2990_v18 = vmax.f32 %v588_v8, 0.0  ;;  %v574_v19 = vmul.f32 2.0, %v2450_v13  ;;  %637 = vmin.xlane.f32.xlu0 %v636_v16  ;;  %v453_v20 = vpop.f32.mrb[13].mxu0 }
 0x10c   : > { %v2992_v22 = vmax.f32 %v587_v11, 0.0  ;;  %v573_v23 = vmul.f32 2.0, %v453_v20 }
 0x10d   : > { %v590_v24 = vsub.f32 %v558_v9, %v574_v19  ;;  %v645_v27 = vsel %vm4765_vm3, %v2990_v18, inf }
 0x10e   : > { %v589_v28 = vsub.f32 %v557_v14, %v573_v23  ;;  %646 = vmin.xlane.f32.xlu1 %v645_v27  ;;  %v2453_v30 = vpop.f32.mrb[14].mxu0  ;;  %v642_v32 = vsel %vm4765_vm3, %v2992_v22, inf }
 0x10f   : > { %v3000_v33 = vmax.f32 %v590_v24, 0.0  ;;  %v576_v34 = vmul.f32 2.0, %v2453_v30  ;;  %643 = vmin.xlane.f32.xlu0 %v642_v32  ;;  %v463_v35 = vpop.f32.mrb[15].mxu0 }
 0x110   : > { %v3002_v36 = vmax.f32 %v589_v28, 0.0  ;;  %v575_v37 = vmul.f32 2.0, %v463_v35 }
 0x111   : > { %v592_v38 = vsub.f32 %v560_v25, %v576_v34  ;;  %v651_v40 = vsel %vm4765_vm3, %v3000_v33, inf }
 0x112   : > { %v591_v41 = vsub.f32 %v559_v31, %v575_v37  ;;  %652 = vmin.xlane.f32.xlu1 %v651_v40  ;;  %v648_v62 = vsel %vm4765_vm3, %v3002_v36, inf }
 0x113   : > { %v3008_v42 = vmax.f32 %v592_v38, 0.0  ;;  %649 = vmin.xlane.f32.xlu0 %v648_v62 }
 0x114   : > { %v3010_v44 = vmax.f32 %v591_v41, 0.0 }
 0x115   : > { %v657_v45 = vsel %vm4765_vm3, %v3008_v42, inf }
 0x116   : > { %658 = vmin.xlane.f32.xlu1 %v657_v45  ;;  %v654_v46 = vsel %vm4765_vm3, %v3010_v44, inf }
 0x117   : > { %655 = vmin.xlane.f32.xlu0 %v654_v46 }
 0x187   : > { %v3018_v49 = vpop.xlane.xlu1 %616 }
 0x188   : > { %vm661_vm4 = vcmp.eq.f32.partialorder %v2940_v12, %v3018_v49  ;;  %v3022_v50 = vpop.xlane.xlu0 %613 }
 0x189   : > { %vm660_vm5 = vcmp.eq.f32.partialorder %v2942_v15, %v3022_v50  ;;  %v677_v51 = vsel %vm661_vm4, %v3016_v48, 8 }
 0x18a   : > { %v3028_v53 = vsel %vm4765_vm3, %v677_v51, 2147483647  ;;  %v676_v54 = vsel %vm660_vm5, %v3016_v48, 8 }
 0x18b   : > { %v3031_v56 = vpop.xlane.xlu1 %622  ;;  %v709_v57 = vshra.s32 %v3028_v53, 16  ;;  %v3035_v58 = vsel %vm4765_vm3, %v676_v54, 2147483647 }
 0x18c   : > { %vm663_vm6 = vcmp.eq.f32.partialorder %v2950_v26, %v3031_v56  ;;  %v3039_v59 = vpop.xlane.xlu0 %619  ;;  %v694_v60 = vshra.s32 %v3035_v58, 16 }
 0x18d   : > { %vm662_vm7 = vcmp.eq.f32.partialorder %v2952_v29, %v3039_v59  ;;  %v3044_v61 = vcvt.s32.f32 %v709_v57  ;;  %v679_v63 = vsel %vm663_vm6, %v3016_v48, 8 }
 0x18e   : > { %v3047_v1 = vcvt.s32.f32 %v694_v60  ;;  %v3050_v2 = vsel %vm4765_vm3, %v679_v63, 2147483647  ;;  %v678_v0 = vsel %vm662_vm7, %v3016_v48, 8 }
 0x18f   : > { %v3053_v4 = vpop.xlane.xlu1 %628  ;;  %712 = vmin.xlane.f32.xlu1 %v3044_v61  ;;  %v739_v5 = vshra.s32 %v3050_v2, 16  ;;  %v3058_v7 = vsel %vm4765_vm3, %v678_v0, 2147483647 }
 0x190   : > { %vm665_vm8 = vcmp.eq.f32.partialorder %v2960_v39, %v3053_v4  ;;  %v3062_v8 = vpop.xlane.xlu0 %625  ;;  %697 = vmin.xlane.f32.xlu0 %v3047_v1  ;;  %v724_v9 = vshra.s32 %v3058_v7, 16 }
 0x191   : > { %4793 = vst [vmem:[#allocation6_spill] sm:$0xff] %v3062_v8  ;;  %vm664_vm9 = vcmp.eq.f32.partialorder %v2962_v43, %v3062_v8  ;;  %v3068_v10 = vcvt.s32.f32 %v739_v5  ;;  %v681_v11 = vsel %vm665_vm8, %v3016_v48, 8 }
 0x192   : > { %v3071_v13 = vcvt.s32.f32 %v724_v9  ;;  %v3074_v14 = vsel %vm4765_vm3, %v681_v11, 2147483647  ;;  %v680_v16 = vsel %vm664_vm9, %v3016_v48, 8 }
 0x193   : > { %v3077_v17 = vpop.xlane.xlu1 %634  ;;  %742 = vmin.xlane.f32.xlu1 %v3068_v10  ;;  %v769_v19 = vshra.s32 %v3074_v14, 16  ;;  %v3082_v20 = vsel %vm4765_vm3, %v680_v16, 2147483647 }
 0x194   : > { %4794 = vst [vmem:[#allocation7_spill] sm:$0xff] %v3077_v17  ;;  %vm667_vm10 = vcmp.eq.f32.partialorder %v2970_v52, %v3077_v17  ;;  %v3086_v21 = vpop.xlane.xlu0 %631  ;;  %727 = vmin.xlane.f32.xlu0 %v3071_v13  ;;  %v754_v23 = vshra.s32 %v3082_v20, 16 }
 0x195   : > { %4795 = vst [vmem:[#allocation8_spill] sm:$0xff] %v3086_v21  ;;  %vm666_vm11 = vcmp.eq.f32.partialorder %v2972_v55, %v3086_v21  ;;  %v3092_v24 = vcvt.s32.f32 %v769_v19  ;;  %v683_v25 = vsel %vm667_vm10, %v3016_v48, 8 }
 0x196   : > { %v3095_v27 = vcvt.s32.f32 %v754_v23  ;;  %v3098_v28 = vsel %vm4765_vm3, %v683_v25, 2147483647  ;;  %v682_v30 = vsel %vm666_vm11, %v3016_v48, 8 }
 0x197   : > { %v3101_v31 = vpop.xlane.xlu1 %640  ;;  %772 = vmin.xlane.f32.xlu1 %v3092_v24  ;;  %v799_v32 = vshra.s32 %v3098_v28, 16  ;;  %v3106_v34 = vsel %vm4765_vm3, %v682_v30, 2147483647 }
 0x198   : > { %4796 = vst [vmem:[#allocation9_spill] sm:$0xff] %v3101_v31  ;;  %vm669_vm12 = vcmp.eq.f32.partialorder %v2980_v3, %v3101_v31  ;;  %v3110_v35 = vpop.xlane.xlu0 %637  ;;  %757 = vmin.xlane.f32.xlu0 %v3095_v27  ;;  %v784_v37 = vshra.s32 %v3106_v34, 16  ;;  %v738_v31 = vand.u32 65535, %v3050_v2  ;;  %v768_v2 = vand.u32 65535, %v3074_v14 }
 0x199   : > { %4797 = vst [vmem:[#allocation10_spill] sm:$0xff] %v3110_v35  ;;  %vm668_vm13 = vcmp.eq.f32.partialorder %v2982_v6, %v3110_v35  ;;  %v3116_v38 = vcvt.s32.f32 %v799_v32  ;;  %v685_v40 = vsel %vm669_vm12, %v3016_v48, 8  ;;  %v798_v14 = vand.u32 65535, %v3098_v28 }
 0x19a   : > { %v3119_v41 = vcvt.s32.f32 %v784_v37  ;;  %v3122_v62 = vsel %vm4765_vm3, %v685_v40, 2147483647  ;;  %v684_v45 = vsel %vm668_vm13, %v3016_v48, 8 }
 0x19b   : > { %v3125_v46 = vpop.xlane.xlu1 %646  ;;  %802 = vmin.xlane.f32.xlu1 %v3116_v38  ;;  %v829_v47 = vshra.s32 %v3122_v62, 16  ;;  %v3130_v51 = vsel %vm4765_vm3, %v684_v45, 2147483647  ;;  %v828_v28 = vand.u32 65535, %v3122_v62 }
 0x19c   : > { %4798 = vst [vmem:[#allocation11_spill] sm:$0xff] %v3125_v46  ;;  %vm671_vm14 = vcmp.eq.f32.partialorder %v2990_v18, %v3125_v46  ;;  %v3134_v54 = vpop.xlane.xlu0 %643  ;;  %787 = vmin.xlane.f32.xlu0 %v3119_v41  ;;  %v814_v57 = vshra.s32 %v3130_v51, 16  ;;  %v693_v46 = vand.u32 65535, %v3035_v58 }
 0x19d   : > { %4799 = vst [vmem:[#allocation12_spill] sm:$0xff] %v3134_v54  ;;  %vm670_vm15 = vcmp.eq.f32.partialorder %v2992_v22, %v3134_v54  ;;  %v3140_v60 = vcvt.s32.f32 %v829_v47  ;;  %v687_v63 = vsel %vm671_vm14, %v3016_v48, 8 }
 0x19e   : > { %v3143_v0 = vcvt.s32.f32 %v814_v57  ;;  %v3146_v5 = vsel %vm4765_vm3, %v687_v63, 2147483647  ;;  %v686_v9 = vsel %vm670_vm15, %v3016_v48, 8 }
 0x19f   : > { %v3149_v11 = vpop.xlane.xlu1 %652  ;;  %832 = vmin.xlane.f32.xlu1 %v3140_v60  ;;  %v859_v16 = vshra.s32 %v3146_v5, 16  ;;  %v3154_v19 = vsel %vm4765_vm3, %v686_v9, 2147483647  ;;  %v858_v62 = vand.u32 65535, %v3146_v5 }
 0x1a0   : > { %4800 = vst [vmem:[#allocation13_spill] sm:$0xff] %v3149_v11  ;;  %vm673_vm0 = vcmp.eq.f32.partialorder %v3000_v33, %v3149_v11  ;;  %v3158_v23 = vpop.xlane.xlu0 %649  ;;  %817 = vmin.xlane.f32.xlu0 %v3143_v0  ;;  %v844_v25 = vshra.s32 %v3154_v19, 16 }
 0x1a1   : > { %4801 = vst [vmem:[#allocation14_spill] sm:$0xff] %v3158_v23  ;;  %vm672_vm1 = vcmp.eq.f32.partialorder %v3002_v36, %v3158_v23  ;;  %v3164_v30 = vcvt.s32.f32 %v859_v16  ;;  %v689_v32 = vsel %vm673_vm0, %v3016_v48, 8 }
 0x1a2   : > { %v3167_v37 = vcvt.s32.f32 %v844_v25  ;;  %v3170_v40 = vsel %vm4765_vm3, %v689_v32, 2147483647  ;;  %v688_v45 = vsel %vm672_vm1, %v3016_v48, 8 }
 0x1a3   : > { %862 = vmin.xlane.f32.xlu1 %v3164_v30  ;;  %v3174_v47 = vpop.xlane.xlu1 %658  ;;  %v889_v57 = vshra.s32 %v3170_v40, 16  ;;  %v3178_v63 = vsel %vm4765_vm3, %v688_v45, 2147483647  ;;  %v888_v5 = vand.u32 65535, %v3170_v40 }
 0x1a4   : > { %4802 = vst [vmem:[#allocation15_spill] sm:$0xff] %v3174_v47  ;;  %vm675_vm2 = vcmp.eq.f32.partialorder %v3008_v42, %v3174_v47  ;;  %847 = vmin.xlane.f32.xlu0 %v3167_v37  ;;  %v3183_v9 = vpop.xlane.xlu0 %655  ;;  %v874_v16 = vshra.s32 %v3178_v63, 16 }
 0x1a5   : > { %4803 = vst [vmem:[#allocation16_spill] sm:$0xff] %v3183_v9  ;;  %vm674_vm4 = vcmp.eq.f32.partialorder %v3010_v44, %v3183_v9  ;;  %v3188_v25 = vcvt.s32.f32 %v889_v57  ;;  %v691_v32 = vsel %vm675_vm2, %v3016_v48, 8 }
 0x1a6   : > { %v3191_v23 = vcvt.s32.f32 %v874_v16  ;;  %v3194_v45 = vsel %vm4765_vm3, %v691_v32, 2147483647  ;;  %v690_v47 = vsel %vm674_vm4, %v3016_v48, 8  ;;  %v708_v32 = vand.u32 65535, %v3028_v53 }
 0x1a7   : > { %892 = vmin.xlane.f32.xlu1 %v3188_v25  ;;  %v919_v11 = vshra.s32 %v3194_v45, 16  ;;  %v3200_v54 = vsel %vm4765_vm3, %v690_v47, 2147483647  ;;  %v918_v40 = vand.u32 65535, %v3194_v45 }
 0x1a8   : > { %877 = vmin.xlane.f32.xlu0 %v3191_v23  ;;  %v904_v57 = vshra.s32 %v3200_v54, 16  ;;  %v710_v47 = vcvt.s32.f32 %v708_v32  ;;  %v740_v32 = vcvt.s32.f32 %v738_v31  ;;  %v770_v31 = vcvt.s32.f32 %v768_v2 }
 0x1a9   : > { %v3204_v9 = vcvt.s32.f32 %v919_v11  ;;  %v695_v11 = vcvt.s32.f32 %v693_v46 }
 0x1aa   : > { %v3206_v16 = vcvt.s32.f32 %v904_v57  ;;  %v723_v57 = vand.u32 65535, %v3058_v7  ;;  %v753_v7 = vand.u32 65535, %v3082_v20  ;;  %v783_v20 = vand.u32 65535, %v3106_v34 }
 0x1ab   : > { %922 = vmin.xlane.f32.xlu1 %v3204_v9  ;;  %v813_v34 = vand.u32 65535, %v3130_v51  ;;  %v843_v51 = vand.u32 65535, %v3154_v19  ;;  %v873_v19 = vand.u32 65535, %v3178_v63  ;;  %v903_v63 = vand.u32 65535, %v3200_v54 }
 0x1ac   : > { %907 = vmin.xlane.f32.xlu0 %v3206_v16 }
 0x1ad   : > { %v905_v45 = vcvt.s32.f32 %v903_v63 }
 0x21c   : > { %v3212_v35 = vpop.xlane.xlu1 %712 }
 0x21d   : > { %v3215_v21 = vpop.xlane.xlu0 %697  ;;  %vm714_vm5 = vcmp.eq.f32.partialorder %v3044_v61, %v3212_v35  ;;  %v725_v61 = vcvt.s32.f32 %v723_v57 }
 0x21e   : > { %v715_v17 = vsel %vm714_vm5, %v710_v47, inf  ;;  %vm699_vm6 = vcmp.eq.f32.partialorder %v3047_v1, %v3215_v21 }
 0x21f   : > { %716 = vmin.xlane.f32.xlu1 %v715_v17  ;;  %v700_v53 = vsel %vm699_vm6, %v695_v11, inf }
 0x220   : > { %v3222_v58 = vpop.xlane.xlu1 %742  ;;  %701 = vmin.xlane.f32.xlu0 %v700_v53  ;;  %v800_v53 = vcvt.s32.f32 %v798_v14  ;;  %v860_v14 = vcvt.s32.f32 %v858_v62 }
 0x221   : > { %v3225_v8 = vpop.xlane.xlu0 %727  ;;  %vm744_vm7 = vcmp.eq.f32.partialorder %v3068_v10, %v3222_v58  ;;  %v755_v10 = vcvt.s32.f32 %v753_v7  ;;  %v830_v7 = vcvt.s32.f32 %v828_v28 }
 0x222   : > { %v745_v46 = vsel %vm744_vm7, %v740_v32, inf  ;;  %vm729_vm8 = vcmp.eq.f32.partialorder %v3071_v13, %v3225_v8 }
 0x223   : > { %746 = vmin.xlane.f32.xlu1 %v745_v46  ;;  %v730_v1 = vsel %vm729_vm8, %v725_v61, inf }
 0x224   : > { %v3232_v17 = vpop.xlane.xlu1 %772  ;;  %731 = vmin.xlane.f32.xlu0 %v730_v1 }
 0x225   : > { %v3235_v47 = vpop.xlane.xlu0 %757  ;;  %vm774_vm9 = vcmp.eq.f32.partialorder %v3092_v24, %v3232_v17  ;;  %v785_v24 = vcvt.s32.f32 %v783_v20 }
 0x226   : > { %v775_v11 = vsel %vm774_vm9, %v770_v31, inf  ;;  %vm759_vm10 = vcmp.eq.f32.partialorder %v3095_v27, %v3235_v47 }
 0x227   : > { %776 = vmin.xlane.f32.xlu1 %v775_v11  ;;  %v760_v13 = vsel %vm759_vm10, %v755_v10, inf }
 0x228   : > { %v3242_v57 = vpop.xlane.xlu1 %802  ;;  %761 = vmin.xlane.f32.xlu0 %v760_v13  ;;  %v890_v13 = vcvt.s32.f32 %v888_v5 }
 0x229   : > { %v3245_v32 = vpop.xlane.xlu0 %787  ;;  %vm804_vm11 = vcmp.eq.f32.partialorder %v3116_v38, %v3242_v57  ;;  %v815_v38 = vcvt.s32.f32 %v813_v34  ;;  %v920_v34 = vcvt.s32.f32 %v918_v40 }
 0x22a   : > { %v805_v2 = vsel %vm804_vm11, %v800_v53, inf  ;;  %vm789_vm12 = vcmp.eq.f32.partialorder %v3119_v41, %v3245_v32 }
 0x22b   : > { %806 = vmin.xlane.f32.xlu1 %v805_v2  ;;  %v790_v27 = vsel %vm789_vm12, %v785_v24, inf }
 0x22c   : > { %v3252_v61 = vpop.xlane.xlu1 %832  ;;  %791 = vmin.xlane.f32.xlu0 %v790_v27  ;;  %v704_v27 = vcvt.f32.s32 %v3215_v21  ;;  %v764_v21 = vcvt.f32.s32 %v3235_v47 }
 0x22d   : > { %v3255_v46 = vpop.xlane.xlu0 %817  ;;  %vm834_vm13 = vcmp.eq.f32.partialorder %v3140_v60, %v3252_v61  ;;  %v845_v60 = vcvt.s32.f32 %v843_v51 }
 0x22e   : > { %v835_v1 = vsel %vm834_vm13, %v830_v7, inf  ;;  %vm819_vm14 = vcmp.eq.f32.partialorder %v3143_v0, %v3255_v46 }
 0x22f   : > { %836 = vmin.xlane.f32.xlu1 %v835_v1  ;;  %v820_v41 = vsel %vm819_vm14, %v815_v38, inf  ;;  %v749_v38 = vcvt.f32.s32 %v3222_v58 }
 0x230   : > { %v3262_v31 = vpop.xlane.xlu1 %862  ;;  %821 = vmin.xlane.f32.xlu0 %v820_v41  ;;  %v705_v41 = vshll.u32 %v704_v27, 16 }
 0x231   : > { %v3265_v10 = vpop.xlane.xlu0 %847  ;;  %vm864_vm15 = vcmp.eq.f32.partialorder %v3164_v30, %v3262_v31  ;;  %v875_v30 = vcvt.s32.f32 %v873_v19 }
 0x232   : > { %v865_v20 = vsel %vm864_vm15, %v860_v14, inf  ;;  %vm849_vm0 = vcmp.eq.f32.partialorder %v3167_v37, %v3265_v10 }
 0x233   : > { %866 = vmin.xlane.f32.xlu1 %v865_v20  ;;  %v850_v0 = vsel %vm849_vm0, %v845_v60, inf }
 0x234   : > { %v3272_v11 = vpop.xlane.xlu1 %892  ;;  %851 = vmin.xlane.f32.xlu0 %v850_v0 }
 0x235   : > { %v3275_v53 = vpop.xlane.xlu0 %877  ;;  %vm894_vm1 = vcmp.eq.f32.partialorder %v3188_v25, %v3272_v11 }
 0x236   : > { %v895_v28 = vsel %vm894_vm1, %v890_v13, inf  ;;  %vm879_vm2 = vcmp.eq.f32.partialorder %v3191_v23, %v3275_v53  ;;  %v719_v23 = vcvt.f32.s32 %v3212_v35  ;;  %v750_v35 = vshll.u32 %v749_v38, 16 }
 0x237   : > { %896 = vmin.xlane.f32.xlu1 %v895_v28  ;;  %v880_v37 = vsel %vm879_vm2, %v875_v30, inf }
 0x238   : > { %v3282_v24 = vpop.xlane.xlu1 %922  ;;  %881 = vmin.xlane.f32.xlu0 %v880_v37  ;;  %v720_v62 = vshll.u32 %v719_v23, 16  ;;  %v765_v37 = vshll.u32 %v764_v21, 16 }
 0x239   : > { %v3284_v2 = vpop.xlane.xlu0 %907  ;;  %vm924_vm4 = vcmp.eq.f32.partialorder %v3204_v9, %v3282_v24  ;;  %v734_v9 = vcvt.f32.s32 %v3225_v8 }
 0x23a   : > { %v925_v25 = vsel %vm924_vm4, %v920_v34, inf  ;;  %vm909_vm5 = vcmp.eq.f32.partialorder %v3206_v16, %v3284_v2  ;;  %v779_v16 = vcvt.f32.s32 %v3232_v17  ;;  %v809_v34 = vcvt.f32.s32 %v3242_v57 }
 0x23b   : > { %926 = vmin.xlane.f32.xlu1 %v925_v25  ;;  %v910_v54 = vsel %vm909_vm5, %v905_v45, inf  ;;  %v735_v58 = vshll.u32 %v734_v9, 16 }
 0x23c   : > { %911 = vmin.xlane.f32.xlu0 %v910_v54  ;;  %v780_v30 = vshll.u32 %v779_v16, 16 }
 0x2ac   : > { %v717_v7 = vpop.xlane.xlu1 %716 }
 0x2ad   : > { %v718_v51 = vcvt.f32.s32 %v717_v7  ;;  %v702_v1 = vpop.xlane.xlu0 %701  ;;  %v839_v7 = vcvt.f32.s32 %v3252_v61 }
 0x2ae   : > { %v703_v14 = vcvt.f32.s32 %v702_v1  ;;  %v824_v1 = vcvt.f32.s32 %v3255_v46 }
 0x2af   : > { %v3294_v5 = vadd.s32 %v720_v62, %v718_v51  ;;  %v810_v51 = vshll.u32 %v809_v34, 16 }
 0x2b0   : > { %v3297_v60 = vadd.s32 %v705_v41, %v703_v14  ;;  %v747_v19 = vpop.xlane.xlu1 %746 }
 0x2b1   : > { %v748_v20 = vcvt.f32.s32 %v747_v19  ;;  %v732_v0 = vpop.xlane.xlu0 %731  ;;  %vm933_vm6 = vcmp.eq.s32.totalorder %v3016_v48, %v3294_v5 }
 0x2b2   : > { %v733_v13 = vcvt.f32.s32 %v732_v0  ;;  %v3306_v8 = vsel %vm933_vm6, 1e+30, %v2940_v12  ;;  %vm932_vm7 = vcmp.eq.s32.totalorder %v3016_v48, %v3297_v60  ;;  %v825_v0 = vshll.u32 %v824_v1, 16 }
 0x2b3   : > { %4804 = vst [vmem:[#allocation17_spill] sm:$0xff] %v3306_v8  ;;  %v3310_v17 = vadd.s32 %v750_v35, %v748_v20  ;;  %v1079_v47 = vsel %vm4765_vm3, %v3306_v8, inf  ;;  %v3318_v40 = vsel %vm932_vm7, 1e+30, %v2942_v15  ;;  %v794_v15 = vcvt.f32.s32 %v3245_v32 }
 0x2b4   : > { %4805 = vst [vmem:[#allocation18_spill] sm:$0xff] %v3318_v40  ;;  %v3320_v63 = vadd.s32 %v735_v58, %v733_v13  ;;  %1080 = vmin.xlane.f32.xlu1 %v1079_v47  ;;  %v777_v12 = vpop.xlane.xlu1 %776  ;;  %v1076_v28 = vsel %vm4765_vm3, %v3318_v40, inf  ;;  %v840_v35 = vshll.u32 %v839_v7, 16  ;;  %v869_v58 = vcvt.f32.s32 %v3262_v31 }
 0x2b5   : > { %v778_v45 = vcvt.f32.s32 %v777_v12  ;;  %1077 = vmin.xlane.f32.xlu0 %v1076_v28  ;;  %v762_v25 = vpop.xlane.xlu0 %761  ;;  %vm935_vm8 = vcmp.eq.s32.totalorder %v3016_v48, %v3310_v17 }
 0x2b6   : > { %v763_v54 = vcvt.f32.s32 %v762_v25  ;;  %v3332_v23 = vsel %vm935_vm8, 1e+30, %v2950_v26  ;;  %vm934_vm9 = vcmp.eq.s32.totalorder %v3016_v48, %v3320_v63  ;;  %v870_v25 = vshll.u32 %v869_v58, 16 }
 0x2b7   : > { %4806 = vst [vmem:[#allocation19_spill] sm:$0xff] %v3332_v23  ;;  %v3336_v27 = vadd.s32 %v780_v30, %v778_v45  ;;  %v1085_v57 = vsel %vm4765_vm3, %v3332_v23, inf  ;;  %v3344_v32 = vsel %vm934_vm9, 1e+30, %v2952_v29  ;;  %v795_v29 = vshll.u32 %v794_v15, 16 }
 0x2b8   : > { %4807 = vst [vmem:[#allocation20_spill] sm:$0xff] %v3344_v32  ;;  %v3347_v62 = vadd.s32 %v765_v37, %v763_v54  ;;  %1086 = vmin.xlane.f32.xlu1 %v1085_v57  ;;  %v807_v26 = vpop.xlane.xlu1 %806  ;;  %v1082_v38 = vsel %vm4765_vm3, %v3344_v32, inf  ;;  %v899_v37 = vcvt.f32.s32 %v3272_v11  ;;  %v884_v15 = vcvt.f32.s32 %v3275_v53 }
 0x2b9   : > { %v808_v41 = vcvt.f32.s32 %v807_v26  ;;  %1083 = vmin.xlane.f32.xlu0 %v1082_v38  ;;  %v792_v9 = vpop.xlane.xlu0 %791  ;;  %vm937_vm10 = vcmp.eq.s32.totalorder %v3016_v48, %v3336_v27 }
 0x2ba   : > { %v793_v14 = vcvt.f32.s32 %v792_v9  ;;  %v3358_v61 = vsel %vm937_vm10, 1e+30, %v2960_v39  ;;  %vm936_vm11 = vcmp.eq.s32.totalorder %v3016_v48, %v3347_v62  ;;  %v885_v9 = vshll.u32 %v884_v15, 16 }
 0x2bb   : > { %4808 = vst [vmem:[#allocation21_spill] sm:$0xff] %v3358_v61  ;;  %v3362_v16 = vadd.s32 %v810_v51, %v808_v41  ;;  %v1091_v46 = vsel %vm4765_vm3, %v3358_v61, inf  ;;  %v3370_v19 = vsel %vm936_vm11, 1e+30, %v2962_v43  ;;  %v854_v43 = vcvt.f32.s32 %v3265_v10 }
 0x2bc   : > { %4810 = vst [vmem:[#allocation23_spill] sm:$0xff] %v3370_v19  ;;  %v3372_v21 = vadd.s32 %v795_v29, %v793_v14  ;;  %1092 = vmin.xlane.f32.xlu1 %v1091_v46  ;;  %v837_v39 = vpop.xlane.xlu1 %836  ;;  %v1088_v20 = vsel %vm4765_vm3, %v3370_v19, inf  ;;  %v900_v51 = vshll.u32 %v899_v37, 16  ;;  %v929_v29 = vcvt.f32.s32 %v3282_v24 }
 0x2bd   : > { %4809 = vst [vmem:[#allocation22_spill] sm:$0xff] %v3362_v16  ;;  %v838_v13 = vcvt.f32.s32 %v837_v39  ;;  %1089 = vmin.xlane.f32.xlu0 %v1088_v20  ;;  %v822_v47 = vpop.xlane.xlu0 %821  ;;  %vm939_vm12 = vcmp.eq.s32.totalorder %v3016_v48, %v3362_v16 }
 0x2be   : > { %4811 = vst [vmem:[#allocation24_spill] sm:$0xff] %v3372_v21  ;;  %v823_v30 = vcvt.f32.s32 %v822_v47  ;;  %v3384_v12 = vsel %vm939_vm12, 1e+30, %v2970_v52  ;;  %vm938_vm13 = vcmp.eq.s32.totalorder %v3016_v48, %v3372_v21 }
 0x2bf   : > { %4812 = vst [vmem:[#allocation25_spill] sm:$0xff] %v3384_v12  ;;  %v3388_v28 = vadd.s32 %v840_v35, %v838_v13  ;;  %v1097_v31 = vsel %vm4765_vm3, %v3384_v12, inf  ;;  %v3396_v10 = vsel %vm938_vm13, 1e+30, %v2972_v55  ;;  %v855_v55 = vshll.u32 %v854_v43, 16 }
 0x2c0   : > { %4814 = vst [vmem:[#allocation27_spill] sm:$0xff] %v3396_v10  ;;  %v3399_v34 = vadd.s32 %v825_v0, %v823_v30  ;;  %1098 = vmin.xlane.f32.xlu1 %v1097_v31  ;;  %v867_v52 = vpop.xlane.xlu1 %866  ;;  %v1094_v45 = vsel %vm4765_vm3, %v3396_v10, inf  ;;  %v930_v13 = vshll.u32 %v929_v29, 16 }
 0x2c1   : > { %4813 = vst [vmem:[#allocation26_spill] sm:$0xff] %v3388_v28  ;;  %v868_v54 = vcvt.f32.s32 %v867_v52  ;;  %1095 = vmin.xlane.f32.xlu0 %v1094_v45  ;;  %v852_v57 = vpop.xlane.xlu0 %851  ;;  %vm941_vm14 = vcmp.eq.s32.totalorder %v3016_v48, %v3388_v28 }
 0x2c2   : > { %4815 = vst [vmem:[#allocation28_spill] sm:$0xff] %v3399_v34  ;;  %v853_v7 = vcvt.f32.s32 %v852_v57  ;;  %v3410_v11 = vsel %vm941_vm14, 1e+30, %v2980_v3  ;;  %vm940_vm15 = vcmp.eq.s32.totalorder %v3016_v48, %v3399_v34 }
 0x2c3   : > { %4816 = vst [vmem:[#allocation29_spill] sm:$0xff] %v3410_v11  ;;  %v3414_v26 = vadd.s32 %v870_v25, %v868_v54  ;;  %v1103_v53 = vsel %vm4765_vm3, %v3410_v11, inf  ;;  %v3422_v38 = vsel %vm940_vm15, 1e+30, %v2982_v6  ;;  %v914_v6 = vcvt.f32.s32 %v3284_v2 }
 0x2c4   : > { %4818 = vst [vmem:[#allocation31_spill] sm:$0xff] %v3422_v38  ;;  %v3424_v1 = vadd.s32 %v855_v55, %v853_v7  ;;  %1104 = vmin.xlane.f32.xlu1 %v1103_v53  ;;  %v897_v3 = vpop.xlane.xlu1 %896  ;;  %v1100_v41 = vsel %vm4765_vm3, %v3422_v38, inf }
 0x2c5   : > { %4817 = vst [vmem:[#allocation30_spill] sm:$0xff] %v3414_v26  ;;  %v898_v14 = vcvt.f32.s32 %v897_v3  ;;  %1101 = vmin.xlane.f32.xlu0 %v1100_v41  ;;  %v882_v46 = vpop.xlane.xlu0 %881  ;;  %vm943_vm0 = vcmp.eq.s32.totalorder %v3016_v48, %v3414_v26  ;;  %v915_v30 = vshll.u32 %v914_v6, 16 }
 0x2c6   : > { %4819 = vst [vmem:[#allocation32_spill] sm:$0xff] %v3424_v1  ;;  %v883_v35 = vcvt.f32.s32 %v882_v46  ;;  %v3436_v39 = vsel %vm943_vm0, 1e+30, %v2990_v18  ;;  %vm942_vm1 = vcmp.eq.s32.totalorder %v3016_v48, %v3424_v1 }
 0x2c7   : > { %4820 = vst [vmem:[#allocation33_spill] sm:$0xff] %v3436_v39  ;;  %v3440_v20 = vadd.s32 %v900_v51, %v898_v14  ;;  %v1109_v24 = vsel %vm4765_vm3, %v3436_v39, inf  ;;  %v3448_v2 = vsel %vm942_vm1, 1e+30, %v2992_v22 }
 0x2c8   : > { %4822 = vst [vmem:[#allocation35_spill] sm:$0xff] %v3448_v2  ;;  %v3450_v0 = vadd.s32 %v885_v9, %v883_v35  ;;  %1110 = vmin.xlane.f32.xlu1 %v1109_v24  ;;  %v927_v58 = vpop.xlane.xlu1 %926  ;;  %v1106_v18 = vsel %vm4765_vm3, %v3448_v2, inf }
 0x2c9   : > { %4821 = vst [vmem:[#allocation34_spill] sm:$0xff] %v3440_v20  ;;  %v928_v47 = vcvt.f32.s32 %v927_v58  ;;  %1107 = vmin.xlane.f32.xlu0 %v1106_v18  ;;  %v912_v43 = vpop.xlane.xlu0 %911  ;;  %vm4731_vm2 = vcmp.eq.s32.totalorder %v3016_v48, %v3440_v20 }
 0x2ca   : > { %4823 = vst [vmem:[#allocation36_spill] sm:$0xff] %v3450_v0  ;;  %v913_v31 = vcvt.f32.s32 %v912_v43  ;;  %v3460_v22 = vsel %vm4731_vm2, 1e+30, %v3000_v33  ;;  %vm4729_vm4 = vcmp.eq.s32.totalorder %v3016_v48, %v3450_v0 }
 0x2cb   : > { %4824 = vst [vmem:[#allocation37_spill] sm:$0xff] %v3460_v22  ;;  %v3464_v37 = vadd.s32 %v930_v13, %v928_v47  ;;  %v1115_v52 = vsel %vm4765_vm3, %v3460_v22, inf  ;;  %v3472_v45 = vsel %vm4729_vm4, 1e+30, %v3002_v36 }
 0x2cc   : > { %4826 = vst [vmem:[#allocation39_spill] sm:$0xff] %v3472_v45  ;;  %v3474_v25 = vadd.s32 %v915_v30, %v913_v31  ;;  %1116 = vmin.xlane.f32.xlu1 %v1115_v52  ;;  %v1112_v33 = vsel %vm4765_vm3, %v3472_v45, inf }
 0x2cd   : > { %4825 = vst [vmem:[#allocation38_spill] sm:$0xff] %v3464_v37  ;;  %1113 = vmin.xlane.f32.xlu0 %v1112_v33  ;;  %vm4730_vm5 = vcmp.eq.s32.totalorder %v3016_v48, %v3464_v37 }
 0x2ce   : > { %4827 = vst [vmem:[#allocation40_spill] sm:$0xff] %v3474_v25  ;;  %v3484_v15 = vsel %vm4730_vm5, 1e+30, %v3008_v42  ;;  %vm4732_vm4 = vcmp.eq.s32.totalorder %v3016_v48, %v3474_v25 }
 0x2cf   : > { %4828 = vst [vmem:[#allocation41_spill] sm:$0xff] %v3484_v15  ;;  %v1121_v36 = vsel %vm4765_vm3, %v3484_v15, inf  ;;  %v3494_v54 = vsel %vm4732_vm4, 1e+30, %v3010_v44 }
 0x2d0   : > { %4829 = vst [vmem:[#allocation42_spill] sm:$0xff] %v3494_v54  ;;  %1122 = vmin.xlane.f32.xlu1 %v1121_v36  ;;  %v1118_v57 = vsel %vm4765_vm3, %v3494_v54, inf }
 0x2d1   : > { %1119 = vmin.xlane.f32.xlu0 %v1118_v57 }
 0x341   : > { %v3498_v55 = vpop.xlane.xlu1 %1080 }
 0x342   : > { %vm1125_vm5 = vcmp.eq.f32.partialorder %v3306_v8, %v3498_v55  ;;  %v3502_v42 = vpop.xlane.xlu0 %1077 }
 0x343   : > { %v1141_v7 = vsel %vm1125_vm5, %v3016_v48, 8  ;;  %vm1124_vm2 = vcmp.eq.f32.partialorder %v3318_v40, %v3502_v42 }
 0x344   : > { %v1140_v44 = vsel %vm1124_vm2, %v3016_v48, 8  ;;  %v3509_v53 = vsel %vm4765_vm3, %v1141_v7, 2147483647 }
 0x345   : > { %v3511_v51 = vpop.xlane.xlu1 %1086  ;;  %v1173_v3 = vshra.s32 %v3509_v53, 16  ;;  %v3515_v41 = vsel %vm4765_vm3, %v1140_v44, 2147483647 }
 0x346   : > { %vm1127_vm4 = vcmp.eq.f32.partialorder %v3332_v23, %v3511_v51  ;;  %v3519_v9 = vpop.xlane.xlu0 %1083  ;;  %v1158_v29 = vshra.s32 %v3515_v41, 16 }
 0x347   : > { %v1143_v14 = vsel %vm1127_vm4, %v3016_v48, 8  ;;  %vm1126_vm2 = vcmp.eq.f32.partialorder %v3344_v32, %v3519_v9  ;;  %v3525_v46 = vcvt.s32.f32 %v1173_v3 }
 0x348   : > { %v1142_v6 = vsel %vm1126_vm2, %v3016_v48, 8  ;;  %v3528_v35 = vcvt.s32.f32 %v1158_v29  ;;  %v3531_v24 = vsel %vm4765_vm3, %v1143_v14, 2147483647 }
 0x349   : > { %1176 = vmin.xlane.f32.xlu1 %v3525_v46  ;;  %v3534_v58 = vpop.xlane.xlu1 %1092  ;;  %v1203_v18 = vshra.s32 %v3531_v24, 16  ;;  %v3538_v13 = vsel %vm4765_vm3, %v1142_v6, 2147483647  ;;  %v1202_v34 = vand.u32 65535, %v3531_v24 }
 0x34a   : > { %vm1129_vm4 = vcmp.eq.f32.partialorder %v3358_v61, %v3534_v58  ;;  %1161 = vmin.xlane.f32.xlu0 %v3528_v35  ;;  %v3543_v47 = vpop.xlane.xlu0 %1089  ;;  %v1188_v43 = vshra.s32 %v3538_v13, 16 }
 0x34b   : > { %v1145_v30 = vsel %vm1129_vm4, %v3016_v48, 8  ;;  %vm1128_vm5 = vcmp.eq.f32.partialorder %v3370_v19, %v3543_v47  ;;  %v3549_v31 = vcvt.s32.f32 %v1203_v18  ;;  %v1204_v24 = vcvt.s32.f32 %v1202_v34 }
 0x34c   : > { %v1144_v52 = vsel %vm1128_vm5, %v3016_v48, 8  ;;  %v3552_v33 = vcvt.s32.f32 %v1188_v43  ;;  %v3555_v36 = vsel %vm4765_vm3, %v1145_v30, 2147483647 }
 0x34d   : > { %1206 = vmin.xlane.f32.xlu1 %v3549_v31  ;;  %v3558_v57 = vpop.xlane.xlu1 %1098  ;;  %v1233_v7 = vshra.s32 %v3555_v36, 16  ;;  %v3562_v44 = vsel %vm4765_vm3, %v1144_v52, 2147483647 }
 0x34e   : > { %vm1131_vm2 = vcmp.eq.f32.partialorder %v3384_v12, %v3558_v57  ;;  %1191 = vmin.xlane.f32.xlu0 %v3552_v33  ;;  %v3567_v3 = vpop.xlane.xlu0 %1095  ;;  %v1218_v29 = vshra.s32 %v3562_v44, 16 }
 0x34f   : > { %v1147_v14 = vsel %vm1131_vm2, %v3016_v48, 8  ;;  %vm1130_vm4 = vcmp.eq.f32.partialorder %v3396_v10, %v3567_v3  ;;  %v3574_v18 = vcvt.s32.f32 %v1233_v7 }
 0x350   : > { %v1146_v6 = vsel %vm1130_vm4, %v3016_v48, 8  ;;  %v3578_v30 = vcvt.s32.f32 %v1218_v29  ;;  %v3581_v52 = vsel %vm4765_vm3, %v1147_v14, 2147483647 }
 0x351   : > { %v3576_v43 = vpop.xlane.xlu1 %1104  ;;  %1236 = vmin.xlane.f32.xlu1 %v3574_v18  ;;  %v1263_v37 = vshra.s32 %v3581_v52, 16  ;;  %v3590_v10 = vsel %vm4765_vm3, %v1146_v6, 2147483647 }
 0x352   : > { %vm1133_vm5 = vcmp.eq.f32.partialorder %v3410_v11, %v3576_v43  ;;  %v3586_v25 = vpop.xlane.xlu0 %1101  ;;  %1221 = vmin.xlane.f32.xlu0 %v3578_v30  ;;  %v1248_v11 = vshra.s32 %v3590_v10, 16 }
 0x353   : > { %v1149_v7 = vsel %vm1133_vm5, %v3016_v48, 8  ;;  %vm1132_vm2 = vcmp.eq.f32.partialorder %v3422_v38, %v3586_v25  ;;  %v3596_v29 = vcvt.s32.f32 %v1263_v37 }
 0x354   : > { %v3602_v12 = vsel %vm4765_vm3, %v1149_v7, 2147483647  ;;  %v1148_v19 = vsel %vm1132_vm2, %v3016_v48, 8  ;;  %v3612_v61 = vcvt.s32.f32 %v1248_v11 }
 0x355   : > { %v3598_v14 = vpop.xlane.xlu1 %1110  ;;  %1266 = vmin.xlane.f32.xlu1 %v3596_v29  ;;  %v1293_v38 = vshra.s32 %v3602_v12, 16 }
 0x356   : > { %4830 = vst [vmem:[#allocation43_spill] sm:$0xff] %v3598_v14  ;;  %vm1135_vm4 = vcmp.eq.f32.partialorder %v3436_v39, %v3598_v14  ;;  %v3608_v6 = vpop.xlane.xlu0 %1107  ;;  %1251 = vmin.xlane.f32.xlu0 %v3612_v61  ;;  %v3623_v39 = vsel %vm4765_vm3, %v1148_v19, 2147483647 }
 0x357   : > { %4831 = vst [vmem:[#allocation44_spill] sm:$0xff] %v3608_v6  ;;  %v1151_v37 = vsel %vm1135_vm4, %v3016_v48, 8  ;;  %vm1134_vm5 = vcmp.eq.f32.partialorder %v3448_v2, %v3608_v6  ;;  %v3618_v32 = vcvt.s32.f32 %v1293_v38  ;;  %v1278_v11 = vshra.s32 %v3623_v39, 16 }
 0x358   : > { %v1150_v7 = vsel %vm1134_vm5, %v3016_v48, 8  ;;  %v3631_v2 = vsel %vm4765_vm3, %v1151_v37, 2147483647 }
 0x359   : > { %v3620_v23 = vpop.xlane.xlu1 %1116  ;;  %v3634_v8 = vsel %vm4765_vm3, %v1150_v7, 2147483647  ;;  %1296 = vmin.xlane.f32.xlu1 %v3618_v32  ;;  %v3638_v0 = vcvt.s32.f32 %v1278_v11  ;;  %v1323_v19 = vshra.s32 %v3631_v2, 16 }
 0x35a   : > { %4832 = vst [vmem:[#allocation45_spill] sm:$0xff] %v3620_v23  ;;  %vm1137_vm2 = vcmp.eq.f32.partialorder %v3460_v22, %v3620_v23  ;;  %v3628_v40 = vpop.xlane.xlu0 %1113  ;;  %v1308_v20 = vshra.s32 %v3634_v8, 16 }
 0x35b   : > { %4833 = vst [vmem:[#allocation46_spill] sm:$0xff] %v3628_v40  ;;  %v1153_v38 = vsel %vm1137_vm2, %v3016_v48, 8  ;;  %vm1136_vm4 = vcmp.eq.f32.partialorder %v3472_v45, %v3628_v40  ;;  %1281 = vmin.xlane.f32.xlu0 %v3638_v0  ;;  %v3655_v1 = vcvt.s32.f32 %v1323_v19 }
 0x35c   : > { %v3652_v7 = vsel %vm4765_vm3, %v1153_v38, 2147483647  ;;  %v1152_v11 = vsel %vm1136_vm4, %v3016_v48, 8  ;;  %v3658_v40 = vcvt.s32.f32 %v1308_v20 }
 0x35d   : > { %v3643_v22 = vpop.xlane.xlu1 %1122  ;;  %1326 = vmin.xlane.f32.xlu1 %v3655_v1  ;;  %v3667_v38 = vsel %vm4765_vm3, %v1152_v11, 2147483647 }
 0x35e   : > { %4834 = vst [vmem:[#allocation47_spill] sm:$0xff] %v3643_v22  ;;  %vm1139_vm5 = vcmp.eq.f32.partialorder %v3484_v15, %v3643_v22  ;;  %v3649_v37 = vpop.xlane.xlu0 %1119  ;;  %v1353_v22 = vshra.s32 %v3652_v7, 16 }
 0x35f   : > { %4835 = vst [vmem:[#allocation48_spill] sm:$0xff] %v3649_v37  ;;  %v1155_v45 = vsel %vm1139_vm5, %v3016_v48, 8  ;;  %vm1138_vm2 = vcmp.eq.f32.partialorder %v3494_v54, %v3649_v37  ;;  %1311 = vmin.xlane.f32.xlu0 %v3658_v40  ;;  %v1338_v54 = vshra.s32 %v3667_v38, 16 }
 0x360   : > { %v1154_v15 = vsel %vm1138_vm2, %v3016_v48, 8  ;;  %v3670_v19 = vsel %vm4765_vm3, %v1155_v45, 2147483647  ;;  %v3675_v23 = vcvt.s32.f32 %v1353_v22  ;;  %v1172_v22 = vand.u32 65535, %v3509_v53 }
 0x361   : > { %v3673_v20 = vsel %vm4765_vm3, %v1154_v15, 2147483647  ;;  %v1383_v37 = vshra.s32 %v3670_v19, 16  ;;  %v3681_v6 = vcvt.s32.f32 %v1338_v54  ;;  %v1157_v15 = vand.u32 65535, %v3515_v41 }
 0x362   : > { %v1368_v26 = vshra.s32 %v3673_v20, 16  ;;  %1356 = vmin.xlane.f32.xlu1 %v3675_v23  ;;  %v1174_v54 = vcvt.s32.f32 %v1172_v22  ;;  %v1232_v22 = vand.u32 65535, %v3555_v36 }
 0x363   : > { %v3683_v11 = vcvt.s32.f32 %v1383_v37  ;;  %1341 = vmin.xlane.f32.xlu0 %v3681_v6  ;;  %v1187_v37 = vand.u32 65535, %v3538_v13 }
 0x364   : > { %v3686_v45 = vcvt.s32.f32 %v1368_v26  ;;  %v1159_v26 = vcvt.s32.f32 %v1157_v15  ;;  %v1262_v15 = vand.u32 65535, %v3581_v52  ;;  %v1234_v36 = vcvt.s32.f32 %v1232_v22 }
 0x365   : > { %v1189_v16 = vcvt.s32.f32 %v1187_v37 }
 0x366   : > { %1386 = vmin.xlane.f32.xlu1 %v3683_v11  ;;  %v1264_v52 = vcvt.s32.f32 %v1262_v15  ;;  %v1352_v15 = vand.u32 65535, %v3652_v7  ;;  %v1382_v7 = vand.u32 65535, %v3670_v19 }
 0x367   : > { %1371 = vmin.xlane.f32.xlu0 %v3686_v45 }
 0x3d6   : > { %v3693_v28 = vpop.xlane.xlu1 %1176 }
 0x3d7   : > { %v3696_v14 = vpop.xlane.xlu0 %1161  ;;  %vm1178_vm4 = vcmp.eq.f32.partialorder %v3525_v46, %v3693_v28  ;;  %v1217_v46 = vand.u32 65535, %v3562_v44 }
 0x3d8   : > { %v1179_v21 = vsel %vm1178_vm4, %v1174_v54, inf  ;;  %vm1163_vm5 = vcmp.eq.f32.partialorder %v3528_v35, %v3696_v14 }
 0x3d9   : > { %1180 = vmin.xlane.f32.xlu1 %v1179_v21  ;;  %v1164_v53 = vsel %vm1163_vm5, %v1159_v26, inf  ;;  %v1219_v54 = vcvt.s32.f32 %v1217_v46  ;;  %v1292_v26 = vand.u32 65535, %v3602_v12  ;;  %v1322_v12 = vand.u32 65535, %v3631_v2 }
 0x3da   : > { %v3702_v41 = vpop.xlane.xlu1 %1206  ;;  %1165 = vmin.xlane.f32.xlu0 %v1164_v53 }
 0x3db   : > { %vm1208_vm2 = vcmp.eq.f32.partialorder %v3549_v31, %v3702_v41  ;;  %v3707_v13 = vpop.xlane.xlu0 %1191  ;;  %v1294_v46 = vcvt.s32.f32 %v1292_v26 }
 0x3dc   : > { %vm1193_vm4 = vcmp.eq.f32.partialorder %v3552_v33, %v3707_v13  ;;  %v1209_v35 = vsel %vm1208_vm2, %v1204_v24, inf  ;;  %v1247_v33 = vand.u32 65535, %v3590_v10 }
 0x3dd   : > { %1210 = vmin.xlane.f32.xlu1 %v1209_v35  ;;  %v1194_v21 = vsel %vm1193_vm4, %v1189_v16, inf  ;;  %v1307_v35 = vand.u32 65535, %v3634_v8 }
 0x3de   : > { %1195 = vmin.xlane.f32.xlu0 %v1194_v21  ;;  %v3713_v34 = vpop.xlane.xlu1 %1236  ;;  %v1249_v24 = vcvt.s32.f32 %v1247_v33 }
 0x3df   : > { %vm1238_vm5 = vcmp.eq.f32.partialorder %v3574_v18, %v3713_v34  ;;  %v3717_v31 = vpop.xlane.xlu0 %1221  ;;  %v1309_v8 = vcvt.s32.f32 %v1307_v35 }
 0x3e0   : > { %vm1223_vm3 = vcmp.eq.f32.partialorder %v3578_v30, %v3717_v31  ;;  %v1239_v44 = vsel %vm1238_vm5, %v1234_v36, inf  ;;  %v1277_v30 = vand.u32 65535, %v3623_v39 }
 0x3e1   : > { %1240 = vmin.xlane.f32.xlu1 %v1239_v44  ;;  %v1224_v16 = vsel %vm1223_vm3, %v1219_v54, inf  ;;  %v1337_v54 = vand.u32 65535, %v3667_v38 }
 0x3e2   : > { %v3722_v37 = vpop.xlane.xlu1 %1266  ;;  %1225 = vmin.xlane.f32.xlu0 %v1224_v16  ;;  %v1279_v39 = vcvt.s32.f32 %v1277_v30  ;;  %v1354_v16 = vcvt.s32.f32 %v1352_v15 }
 0x3e3   : > { %vm1268_vm2 = vcmp.eq.f32.partialorder %v3596_v29, %v3722_v37  ;;  %v3727_v53 = vpop.xlane.xlu0 %1251  ;;  %v1339_v26 = vcvt.s32.f32 %v1337_v54 }
 0x3e4   : > { %v1269_v18 = vsel %vm1268_vm2, %v1264_v52, inf  ;;  %vm1253_vm4 = vcmp.eq.f32.partialorder %v3612_v61, %v3727_v53 }
 0x3e5   : > { %1270 = vmin.xlane.f32.xlu1 %v1269_v18  ;;  %v1254_v22 = vsel %vm1253_vm4, %v1249_v24, inf  ;;  %v1384_v18 = vcvt.s32.f32 %v1382_v7  ;;  %v4844_v7 = vld [vmem:[#allocation14_spill] sm:$0xff] }
 0x3e6   : > { %v3732_v10 = vpop.xlane.xlu1 %1296  ;;  %1255 = vmin.xlane.f32.xlu0 %v1254_v22  ;;  %v948_v22 = vadd.f32 1e-08, %v3022_v50  ;;  %v4840_v50 = vld [vmem:[#allocation10_spill] sm:$0xff] }
 0x3e7   : > { %vm1298_vm3 = vcmp.eq.f32.partialorder %v3618_v32, %v3732_v10  ;;  %v1324_v32 = vcvt.s32.f32 %v1322_v12  ;;  %v950_v12 = vadd.f32 1e-08, %v3039_v59  ;;  %v4841_v59 = vld [vmem:[#allocation11_spill] sm:$0xff] }
 0x3e8   : > { %v1299_v29 = vsel %vm1298_vm3, %v1294_v46, inf  ;;  %v3738_v21 = vpop.xlane.xlu0 %1281  ;;  %v951_v46 = vadd.f32 1e-08, %v3031_v56  ;;  %v956_v56 = vadd.f32 1e-08, %v4840_v50 }
 0x3e9   : > { %1300 = vmin.xlane.f32.xlu1 %v1299_v29  ;;  %vm1283_vm5 = vcmp.eq.f32.partialorder %v3638_v0, %v3738_v21  ;;  %v4836_v29 = vld [vmem:[#allocation6_spill] sm:$0xff] }
 0x3ea   : > { %v1284_v61 = vsel %vm1283_vm5, %v1279_v39, inf  ;;  %v3743_v36 = vpop.xlane.xlu1 %1326  ;;  %v952_v35 = vadd.f32 1e-08, %v4836_v29  ;;  %v4837_v39 = vld [vmem:[#allocation7_spill] sm:$0xff]  ;;  %v1414_v29 = vadd.f32 1e-08, %v3519_v9 }
 0x3eb   : > { %1285 = vmin.xlane.f32.xlu0 %v1284_v61  ;;  %vm1328_vm2 = vcmp.eq.f32.partialorder %v3655_v1, %v3743_v36  ;;  %v1367_v1 = vand.u32 65535, %v3673_v20  ;;  %v4838_v61 = vld [vmem:[#allocation8_spill] sm:$0xff] }
 0x3ec   : > { %v3747_v2 = vpop.xlane.xlu0 %1311  ;;  %v1329_v44 = vsel %vm1328_vm2, %v1324_v32, inf  ;;  %v954_v15 = vadd.f32 1e-08, %v4838_v61  ;;  %v1416_v61 = vadd.f32 1e-08, %v3543_v47 }
 0x3ed   : > { %vm1313_vm4 = vcmp.eq.f32.partialorder %v3658_v40, %v3747_v2  ;;  %1330 = vmin.xlane.f32.xlu1 %v1329_v44  ;;  %v1369_v20 = vcvt.s32.f32 %v1367_v1  ;;  %v4843_v44 = vld [vmem:[#allocation13_spill] sm:$0xff]  ;;  %v1418_v47 = vadd.f32 1e-08, %v3567_v3 }
 0x3ee   : > { %v1314_v0 = vsel %vm1313_vm4, %v1309_v8, inf  ;;  %v959_v8 = vadd.f32 1e-08, %v4841_v59 }
 0x3ef   : > { %v3753_v33 = vpop.xlane.xlu1 %1356  ;;  %1315 = vmin.xlane.f32.xlu0 %v1314_v0  ;;  %v961_v0 = vadd.f32 1e-08, %v4843_v44 }
 0x3f0   : > { %vm1358_vm3 = vcmp.eq.f32.partialorder %v3675_v23, %v3753_v33  ;;  %v3758_v52 = vpop.xlane.xlu0 %1341 }
 0x3f1   : > { %v1359_v38 = vsel %vm1358_vm3, %v1354_v16, inf  ;;  %vm1343_vm5 = vcmp.eq.f32.partialorder %v3681_v6, %v3758_v52  ;;  %v949_v6 = vadd.f32 1e-08, %v3018_v49  ;;  %v4839_v49 = vld [vmem:[#allocation9_spill] sm:$0xff]  ;;  %v960_v16 = vadd.f32 1e-08, %v4844_v7 }
 0x3f2   : > { %1360 = vmin.xlane.f32.xlu1 %v1359_v38  ;;  %v1344_v19 = vsel %vm1343_vm5, %v1339_v26, inf  ;;  %v957_v32 = vadd.f32 1e-08, %v4839_v49  ;;  %v4845_v38 = vld [vmem:[#allocation15_spill] sm:$0xff] }
 0x3f3   : > { %v3762_v40 = vpop.xlane.xlu1 %1386  ;;  %1345 = vmin.xlane.f32.xlu0 %v1344_v19  ;;  %2579 = vrcp.f32 %v949_v6  ;;  %v963_v26 = vadd.f32 1e-08, %v4845_v38  ;;  %v4859_v7 = vld [vmem:[#allocation43_spill] sm:$0xff] }
 0x3f4   : > { %vm1388_vm2 = vcmp.eq.f32.partialorder %v3683_v11, %v3762_v40  ;;  %v3766_v24 = vpop.xlane.xlu0 %1371  ;;  %v953_v11 = vadd.f32 1e-08, %v3053_v4  ;;  %2581 = vrcp.f32 %v948_v22  ;;  %v4842_v4 = vld [vmem:[#allocation12_spill] sm:$0xff]  ;;  %v1412_v22 = vadd.f32 1e-08, %v3502_v42 }
 0x3f5   : > { %v1389_v23 = vsel %vm1388_vm2, %v1384_v18, inf  ;;  %vm1373_vm4 = vcmp.eq.f32.partialorder %v3686_v45, %v3766_v24  ;;  %2583 = vrcp.f32 %v951_v46  ;;  %v955_v45 = vadd.f32 1e-08, %v4837_v39  ;;  %v4846_v18 = vld [vmem:[#allocation16_spill] sm:$0xff] }
 0x3f6   : > { %1390 = vmin.xlane.f32.xlu1 %v1389_v23  ;;  %v1374_v30 = vsel %vm1373_vm4, %v1369_v20, inf  ;;  %2585 = vrcp.f32 %v950_v12  ;;  %v958_v54 = vadd.f32 1e-08, %v4842_v4  ;;  %v962_v23 = vadd.f32 1e-08, %v4846_v18 }
 0x3f7   : > { %1375 = vmin.xlane.f32.xlu0 %v1374_v30  ;;  %2587 = vrcp.f32 %v953_v11  ;;  %v1413_v30 = vadd.f32 1e-08, %v3498_v55  ;;  %v1415_v12 = vadd.f32 1e-08, %v3511_v51  ;;  %v4768_v39 = vmov 0.0  }
 0x3f8   : > { %2589 = vrcp.f32 %v952_v35  ;;  %v2325_v55 = vsel %vm933_vm6, 1.0, %v4768_v39  ;;  %v2324_v42 = vsel %vm932_vm7, 1.0, %v4768_v39  ;;  %v1417_v51 = vadd.f32 1e-08, %v3534_v58 }
 0x3f9   : > { %2591 = vrcp.f32 %v955_v45  ;;  %v2327_v9 = vsel %vm935_vm8, 1.0, %v4768_v39  ;;  %v2326_v5 = vsel %vm934_vm9, 1.0, %v4768_v39  ;;  %v2329_v58 = vsel %vm937_vm10, 1.0, %v4768_v39 }
 0x3fa   : > { %2593 = vrcp.f32 %v954_v15  ;;  %v1419_v15 = vadd.f32 1e-08, %v3558_v57  ;;  %v1421_v57 = vadd.f32 1e-08, %v3576_v43  ;;  %v2328_v3 = vsel %vm936_vm11, 1.0, %v4768_v39 }
 0x3fb   : > { %2595 = vrcp.f32 %v957_v32  ;;  %v2331_v43 = vsel %vm939_vm12, 1.0, %v4768_v39  ;;  %v2333_v38 = vsel %vm941_vm14, 1.0, %v4768_v39  ;;  %v2332_v18 = vsel %vm940_vm15, 1.0, %v4768_v39 }
 0x3fc   : > { %2597 = vrcp.f32 %v956_v56  ;;  %vm4878_vm10 = vcmask 64512  }
 0x3fd   : > { %v3784_v1 = vpop.eup %2579  ;;  %2599 = vrcp.f32 %v959_v8  ;;  %v1420_v8 = vadd.f32 1e-08, %v3586_v25  ;;  %vm4880_vm11 = vmmov %vm4878_vm10 }
 0x3fe   : > { %v3787_v19 = vpop.eup %2581  ;;  %2601 = vrcp.f32 %v958_v54  ;;  %v3834_v49 = vmul.f32 %v3784_v1, %v2325_v55  ;;  %v2335_v55 = vsel %vm943_vm0, 1.0, %v4768_v39  ;;  %v1183_v54 = vcvt.f32.s32 %v3693_v28  ;;  %v4871_v28 = vld [vmem:[#allocation34_spill] sm:$0xff]  ;;  %vm4884_vm14 = vmmov %vm4878_vm10 }
 0x3ff   : > { %v3790_v20 = vpop.eup %2583  ;;  %2603 = vrcp.f32 %v961_v0  ;;  %v3837_v63 = vmul.f32 %v3787_v19, %v2324_v42  ;;  %v2330_v0 = vsel %vm938_vm13, 1.0, %v4768_v39  ;;  %v4866_v42 = vld [vmem:[#allocation45_spill] sm:$0xff]  ;;  %vm4872_vm6 = vcmp.eq.s32.totalorder %v3016_v48, %v4871_v28  ;;  %vm4889_vm15 = vmmov %vm4878_vm10 }
 0x400   : > { %v3793_v6 = vpop.eup %2585  ;;  %2605 = vrcp.f32 %v960_v16  ;;  %v3843_v50 = vmul.f32 %v3790_v20, %v2327_v9  ;;  %v1423_v16 = vadd.f32 1e-08, %v4859_v7  ;;  %v1168_v7 = vcvt.f32.s32 %v3696_v14  ;;  %v4874_v14 = vld [vmem:[#allocation36_spill] sm:$0xff]  ;;  %vm4892_vm3 = vmmov %vm4878_vm10 }
 0x401   : > { %4847 = vst [vmem:[#allocation6_spill] sm:$0xff] %v3793_v6  ;;  %v3796_v46 = vpop.eup %2587  ;;  %2607 = vrcp.f32 %v963_v26  ;;  %v3846_v27 = vmul.f32 %v3793_v6, %v2326_v5  ;;  %v2334_v26 = vsel %vm942_vm1, 1.0, %v4768_v39  ;;  %vm4875_vm7 = vcmp.eq.s32.totalorder %v3016_v48, %v4874_v14  ;;  %vm4894_vm5 = vmmov %vm4892_vm3 }
 0x402   : > { %4848 = vst [vmem:[#allocation7_spill] sm:$0xff] %v3796_v46  ;;  %v3799_v11 = vpop.eup %2589  ;;  %2609 = vrcp.f32 %v962_v23  ;;  %v3852_v59 = vmul.f32 %v3796_v46, %v2329_v58  ;;  %v4863_v23 = vld [vmem:[#allocation44_spill] sm:$0xff]  ;;  %v4868_v58 = vld [vmem:[#allocation46_spill] sm:$0xff]  ;;  %v1228_v28 = vcvt.f32.s32 %v3717_v31  ;;  %vm4898_vm4 = vmmov %vm4892_vm3 }
 0x403   : > { %4849 = vst [vmem:[#allocation8_spill] sm:$0xff] %v3799_v11  ;;  %v3802_v35 = vpop.eup %2591  ;;  %2611 = vrcp.f32 %v1413_v30  ;;  %v1422_v30 = vadd.f32 1e-08, %v4863_v23 }
 0x404   : > { %4850 = vst [vmem:[#allocation9_spill] sm:$0xff] %v3802_v35  ;;  %v3813_v45 = vpop.eup %2593  ;;  %2613 = vrcp.f32 %v1412_v22  ;;  %v3894_v5 = vmul.f32 %v3802_v35, %v2331_v43 }
 0x405   : > { %4851 = vst [vmem:[#allocation10_spill] sm:$0xff] %v3813_v45  ;;  %v3824_v60 = vpop.eup %2595  ;;  %2615 = vrcp.f32 %v1415_v12  ;;  %v3884_v12 = vmul.f32 %v3799_v11, %v2328_v3 }
 0x406   : > { %4852 = vst [vmem:[#allocation11_spill] sm:$0xff] %v3824_v60  ;;  %v3831_v17 = vpop.eup %2597  ;;  %2617 = vrcp.f32 %v1414_v29  ;;  %v3903_v3 = vmul.f32 %v3824_v60, %v2333_v38  ;;  %v2336_v29 = vsel %vm4875_vm7, 1.0, %v4768_v39  ;;  %v1184_v38 = vshll.u32 %v1183_v54, 16  ;;  %vm4901_vm7 = vmmov %vm4892_vm3 }
 0x407   : > { %4853 = vst [vmem:[#allocation12_spill] sm:$0xff] %v3831_v17  ;;  %v3840_v32 = vpop.eup %2599  ;;  %2619 = vrcp.f32 %v1417_v51  ;;  %v1425_v51 = vadd.f32 1e-08, %v4866_v42  ;;  %v1198_v42 = vcvt.f32.s32 %v3707_v13 }
 0x408   : > { %4854 = vst [vmem:[#allocation13_spill] sm:$0xff] %v3840_v32  ;;  %v3849_v56 = vpop.eup %2601  ;;  %2621 = vrcp.f32 %v1416_v61  ;;  %v3897_v61 = vmul.f32 %v3813_v45, %v2330_v0  ;;  %v3912_v43 = vmul.f32 %v3840_v32, %v2335_v55  ;;  %v1213_v55 = vcvt.f32.s32 %v3702_v41 }
 0x409   : > { %4855 = vst [vmem:[#allocation14_spill] sm:$0xff] %v3849_v56  ;;  %v3859_v4 = vpop.eup %2603  ;;  %2623 = vrcp.f32 %v1419_v15  ;;  %v1424_v15 = vadd.f32 1e-08, %v4868_v58  ;;  %v3942_v14 = vmul.f32 %v3849_v56, %v2334_v26  ;;  %v1199_v60 = vshll.u32 %v1198_v42, 16 }
 0x40a   : > { %4856 = vst [vmem:[#allocation15_spill] sm:$0xff] %v3859_v4  ;;  %v3870_v62 = vpop.eup %2605  ;;  %2625 = vrcp.f32 %v1418_v47  ;;  %v1273_v26 = vcvt.f32.s32 %v3722_v37  ;;  %v1229_v45 = vshll.u32 %v1228_v28, 16 }
 0x40b   : > { %4860 = vst [vmem:[#allocation16_spill] sm:$0xff] %v3870_v62  ;;  %v3881_v22 = vpop.eup %2607  ;;  %2627 = vrcp.f32 %v1421_v57  ;;  %v3906_v57 = vmul.f32 %v3831_v17, %v2332_v18  ;;  %v4873_v18 = vld [vmem:[#allocation48_spill] sm:$0xff]  ;;  %v3950_v54 = vmul.f32 %v3870_v62, %v2336_v29 }
 0x40c   : > { %4864 = vst [vmem:[#allocation22_spill] sm:$0xff] %v3881_v22  ;;  %v3891_v9 = vpop.eup %2609  ;;  %2629 = vrcp.f32 %v1420_v8  ;;  %v4869_v8 = vld [vmem:[#allocation47_spill] sm:$0xff]  ;;  %v1426_v23 = vadd.f32 1e-08, %v4873_v18 }
 0x40d   : > { %4867 = vst [vmem:[#allocation24_spill] sm:$0xff] %v3891_v9  ;;  %v3900_v47 = vpop.eup %2611  ;;  %2631 = vrcp.f32 %v1423_v16  ;;  %v1427_v0 = vadd.f32 1e-08, %v4869_v8  ;;  %v2337_v16 = vsel %vm4872_vm6, 1.0, %v4768_v39 }
 0x40e   : > { %v3909_v44 = vpop.eup %2613  ;;  %2633 = vrcp.f32 %v1422_v30  ;;  %v3947_v13 = vmul.f32 %v3859_v4, %v2337_v16 }
 0x40f   : > { %v3916_v25 = vpop.eup %2615  ;;  %2635 = vrcp.f32 %v1425_v51  ;;  %v1243_v51 = vcvt.f32.s32 %v3713_v34 }
 0x410   : > { %v3927_v30 = vpop.eup %2617  ;;  %2637 = vrcp.f32 %v1424_v15  ;;  %v1169_v15 = vshll.u32 %v1168_v7, 16 }
 0x411   : > { %v3935_v8 = vpop.eup %2619  ;;  %2639 = vrcp.f32 %v1427_v0 }
 0x412   : > { %v3939_v17 = vpop.eup %2621  ;;  %2641 = vrcp.f32 %v1426_v23 }
 0x413   : > { %v3944_v39 = vpop.eup %2623 }
 0x414   : > { %v3952_v31 = vpop.eup %2625 }
 0x415   : > { %v3955_v7 = vpop.eup %2627 }
 0x416   : > { %v3958_v29 = vpop.eup %2629 }
 0x417   : > { %v3965_v37 = vpop.eup %2631 }
 0x466   : > { %v1181_v58 = vpop.xlane.xlu1 %1180 }
 0x467   : > { %v1182_v18 = vcvt.f32.s32 %v1181_v58  ;;  %v1166_v32 = vpop.xlane.xlu0 %1165  ;;  %v1214_v58 = vshll.u32 %v1213_v55, 16  ;;  %v4877_v55 = vmov 0.0  }
 0x468   : > { %v1167_v41 = vcvt.f32.s32 %v1166_v32  ;;  %v1244_v32 = vshll.u32 %v1243_v51, 16 }
 0x469   : > { %v1185_v34 = vadd.s32 %v1184_v38, %v1182_v18  ;;  %v4876_v38 = vld [vmem:[#allocation17_spill] sm:$0xff] }
 0x46a   : > { %v1170_v56 = vadd.s32 %v1169_v15, %v1167_v41  ;;  %v1211_v0 = vpop.xlane.xlu1 %1210  ;;  %v4879_v41 = vld [vmem:[#allocation18_spill] sm:$0xff] }
 0x46b   : > { %v1212_v35 = vcvt.f32.s32 %v1211_v0  ;;  %v1196_v16 = vpop.xlane.xlu0 %1195  ;;  %vm1397_vm8 = vcmp.eq.s32.totalorder %v3016_v48, %v1185_v34  ;;  %v3973_v0 = vpop.eup %2633 }
 0x46c   : > { %v1197_v23 = vcvt.f32.s32 %v1196_v16  ;;  %v3961_v18 = vsel %vm1397_vm8, 1e+30, %v4876_v38  ;;  %v2341_v42 = vsel %vm1397_vm8, 1.0, %v4877_v55  ;;  %vm1396_vm9 = vcmp.eq.s32.totalorder %v3016_v48, %v1170_v56  ;;  %v3978_v4 = vpop.eup %2635 }
 0x46d   : > { %v1215_v15 = vadd.s32 %v1214_v58, %v1212_v35  ;;  %v1543_v51 = vsel %vm4878_vm10, %v3961_v18, inf  ;;  %v1477_v28 = vmul.f32 %v3900_v47, %v2341_v42  ;;  %v3971_v34 = vsel %vm1396_vm9, 1e+30, %v4879_v41 }
 0x46e   : > { %v1274_v16 = vshll.u32 %v1273_v26, 16  ;;  %v1200_v38 = vadd.s32 %v1199_v60, %v1197_v23  ;;  %1544 = vmin.xlane.f32.xlu1 %v1543_v51  ;;  %v1540_v62 = vsel %vm4880_vm11, %v3971_v34, inf  ;;  %v2340_v56 = vsel %vm1396_vm9, 1.0, %v4877_v55  ;;  %v1241_v42 = vpop.xlane.xlu1 %1240  ;;  %v3986_v60 = vpop.eup %2637  ;;  %v4882_v51 = vld [vmem:[#allocation19_spill] sm:$0xff]  ;;  %vm4904_vm9 = vmmov %vm4892_vm3 }
 0x46f   : > { %v1258_v35 = vcvt.f32.s32 %v3727_v53  ;;  %v3982_v58 = vadd.f32 %v1477_v28, %v3834_v49  ;;  %1541 = vmin.xlane.f32.xlu0 %v1540_v62  ;;  %v1476_v41 = vmul.f32 %v3909_v44, %v2340_v56  ;;  %vm1399_vm12 = vcmp.eq.s32.totalorder %v3016_v48, %v1215_v15  ;;  %v1226_v23 = vpop.xlane.xlu0 %1225  ;;  %v3999_v28 = vpop.eup %2639  ;;  %vm4907_vm11 = vmmov %vm4892_vm3 }
 0x470   : > { %v1242_v26 = vcvt.f32.s32 %v1241_v42  ;;  %v3989_v11 = vsel %vm1399_vm12, 1e+30, %v4882_v51  ;;  %v2343_v46 = vsel %vm1399_vm12, 1.0, %v4877_v55  ;;  %vm1398_vm13 = vcmp.eq.s32.totalorder %v3016_v48, %v1200_v38  ;;  %4885 = vst [vmem:[#allocation28_spill] sm:$0xff] %v3999_v28  ;;  %v4886_v51 = vld [vmem:[#allocation20_spill] sm:$0xff]  ;;  %v4006_v6 = vpop.eup %2641 }
 0x471   : > { %4881 = vst [vmem:[#allocation43_spill] sm:$0xff] %v3982_v58  ;;  %v3994_v53 = vadd.f32 %v1476_v41, %v3837_v63  ;;  %v1227_v49 = vcvt.f32.s32 %v1226_v23  ;;  %v1549_v62 = vsel %vm4884_vm14, %v3989_v11, inf  ;;  %v1479_v15 = vmul.f32 %v3916_v25, %v2343_v46  ;;  %4887 = vst [vmem:[#allocation44_spill] sm:$0xff] %v4006_v6 }
 0x472   : > { %v1303_v56 = vcvt.f32.s32 %v3732_v10  ;;  %v1245_v42 = vadd.s32 %v1244_v32, %v1242_v26  ;;  %1550 = vmin.xlane.f32.xlu1 %v1549_v62  ;;  %v4003_v58 = vsel %vm1398_vm13, 1e+30, %v4886_v51  ;;  %v2342_v38 = vsel %vm1398_vm13, 1.0, %v4877_v55  ;;  %v1271_v23 = vpop.xlane.xlu1 %1270  ;;  %vm4910_vm14 = vmmov %vm4892_vm3 }
 0x473   : > { %4883 = vst [vmem:[#allocation26_spill] sm:$0xff] %v3994_v53  ;;  %v1230_v63 = vadd.s32 %v1229_v45, %v1227_v49  ;;  %v4009_v41 = vadd.f32 %v1479_v15, %v3843_v50  ;;  %v1546_v46 = vsel %vm4889_vm15, %v4003_v58, inf  ;;  %v1478_v53 = vmul.f32 %v3927_v30, %v2342_v38  ;;  %v4891_v45 = vld [vmem:[#allocation21_spill] sm:$0xff]  ;;  %v1256_v51 = vpop.xlane.xlu0 %1255  ;;  %v4893_v38 = vld [vmem:[#allocation23_spill] sm:$0xff] }
 0x474   : > { %v1259_v10 = vshll.u32 %v1258_v35, 16  ;;  %v1288_v32 = vcvt.f32.s32 %v3738_v21  ;;  %v1272_v26 = vcvt.f32.s32 %v1271_v23  ;;  %1547 = vmin.xlane.f32.xlu0 %v1546_v46  ;;  %vm1401_vm0 = vcmp.eq.s32.totalorder %v3016_v48, %v1245_v42 }
 0x475   : > { %4888 = vst [vmem:[#allocation30_spill] sm:$0xff] %v4009_v41  ;;  %v4017_v62 = vadd.f32 %v1478_v53, %v3846_v27  ;;  %v4020_v49 = vsel %vm1401_vm0, 1e+30, %v4891_v45  ;;  %v2345_v50 = vsel %vm1401_vm0, 1.0, %v4877_v55  ;;  %vm1400_vm1 = vcmp.eq.s32.totalorder %v3016_v48, %v1230_v63  ;;  %vm4915_vm0 = vmmov %vm4892_vm3 }
 0x476   : > { %v1275_v15 = vadd.s32 %v1274_v16, %v1272_v26  ;;  %v1555_v35 = vsel %vm4892_vm3, %v4020_v49, inf  ;;  %v1481_v21 = vmul.f32 %v3935_v8, %v2345_v50  ;;  %v4028_v23 = vsel %vm1400_vm1, 1e+30, %v4893_v38  ;;  %v1301_v26 = vpop.xlane.xlu1 %1300 }
 0x477   : > { %4890 = vst [vmem:[#allocation45_spill] sm:$0xff] %v4017_v62  ;;  %v1304_v42 = vshll.u32 %v1303_v56, 16  ;;  %v1257_v27 = vcvt.f32.s32 %v1256_v51  ;;  %1556 = vmin.xlane.f32.xlu1 %v1555_v35  ;;  %v1552_v53 = vsel %vm4894_vm5, %v4028_v23, inf  ;;  %v2344_v46 = vsel %vm1400_vm1, 1.0, %v4877_v55  ;;  %v4896_v51 = vld [vmem:[#allocation25_spill] sm:$0xff]  ;;  %vm4920_vm5 = vmmov %vm4915_vm0 }
 0x478   : > { %v1333_v63 = vcvt.f32.s32 %v3743_v36  ;;  %v4035_v16 = vadd.f32 %v1481_v21, %v3852_v59  ;;  %1553 = vmin.xlane.f32.xlu0 %v1552_v53  ;;  %v1480_v45 = vmul.f32 %v3939_v17, %v2344_v46  ;;  %vm1403_vm2 = vcmp.eq.s32.totalorder %v3016_v48, %v1275_v15 }
 0x479   : > { %v1260_v50 = vadd.s32 %v1259_v10, %v1257_v27  ;;  %v1302_v56 = vcvt.f32.s32 %v1301_v26  ;;  %v4040_v35 = vsel %vm1403_vm2, 1e+30, %v4896_v51  ;;  %v2347_v38 = vsel %vm1403_vm2, 1.0, %v4877_v55  ;;  %v1286_v27 = vpop.xlane.xlu0 %1285 }
 0x47a   : > { %4895 = vst [vmem:[#allocation46_spill] sm:$0xff] %v4035_v16  ;;  %v1289_v62 = vshll.u32 %v1288_v32, 16  ;;  %v4044_v41 = vadd.f32 %v1480_v45, %v3884_v12  ;;  %v1561_v36 = vsel %vm4898_vm4, %v4040_v35, inf  ;;  %v1483_v59 = vmul.f32 %v3944_v39, %v2347_v38  ;;  %v4900_v12 = vld [vmem:[#allocation27_spill] sm:$0xff] }
 0x47b   : > { %v1318_v21 = vcvt.f32.s32 %v3747_v2  ;;  %v1363_v15 = vcvt.f32.s32 %v3753_v33  ;;  %v1305_v10 = vadd.s32 %v1304_v42, %v1302_v56  ;;  %1562 = vmin.xlane.f32.xlu1 %v1561_v36  ;;  %vm1402_vm6 = vcmp.eq.s32.totalorder %v3016_v48, %v1260_v50  ;;  %v1331_v56 = vpop.xlane.xlu1 %1330 }
 0x47c   : > { %4897 = vst [vmem:[#allocation47_spill] sm:$0xff] %v4044_v41  ;;  %v1287_v53 = vcvt.f32.s32 %v1286_v27  ;;  %v4053_v32 = vadd.f32 %v1483_v59, %v3894_v5  ;;  %v4056_v46 = vsel %vm1402_vm6, 1e+30, %v4900_v12  ;;  %v2346_v26 = vsel %vm1402_vm6, 1.0, %v4877_v55  ;;  %v4902_v5 = vld [vmem:[#allocation29_spill] sm:$0xff]  ;;  %vm4923_vm6 = vmmov %vm4915_vm0 }
 0x47d   : > { %v1334_v45 = vshll.u32 %v1333_v63, 16  ;;  %v1558_v2 = vsel %vm4901_vm7, %v4056_v46, inf  ;;  %v1482_v33 = vmul.f32 %v3952_v31, %v2346_v26  ;;  %vm1405_vm8 = vcmp.eq.s32.totalorder %v3016_v48, %v1305_v10  ;;  %v1316_v59 = vpop.xlane.xlu0 %1315  ;;  %vm4925_vm7 = vmmov %vm4915_vm0 }
 0x47e   : > { %4899 = vst [vmem:[#allocation32_spill] sm:$0xff] %v4053_v32  ;;  %v1348_v42 = vcvt.f32.s32 %v3758_v52  ;;  %v1290_v50 = vadd.s32 %v1289_v62, %v1287_v53  ;;  %1559 = vmin.xlane.f32.xlu0 %v1558_v2  ;;  %v4065_v51 = vsel %vm1405_vm8, 1e+30, %v4902_v5  ;;  %v2349_v38 = vsel %vm1405_vm8, 1.0, %v4877_v55  ;;  %v4906_v2 = vld [vmem:[#allocation31_spill] sm:$0xff] }
 0x47f   : > { %v1332_v36 = vcvt.f32.s32 %v1331_v56  ;;  %v4069_v63 = vadd.f32 %v1482_v33, %v3897_v61  ;;  %v1567_v27 = vsel %vm4904_vm9, %v4065_v51, inf  ;;  %v1485_v10 = vmul.f32 %v3955_v7, %v2349_v38  ;;  %vm4928_vm9 = vmmov %vm4915_vm0 }
 0x480   : > { %v1319_v12 = vshll.u32 %v1318_v21, 16  ;;  %v1364_v52 = vshll.u32 %v1363_v15, 16  ;;  %v1317_v62 = vcvt.f32.s32 %v1316_v59  ;;  %1568 = vmin.xlane.f32.xlu1 %v1567_v27  ;;  %vm1404_vm10 = vcmp.eq.s32.totalorder %v3016_v48, %v1290_v50  ;;  %v4909_v59 = vld [vmem:[#allocation33_spill] sm:$0xff] }
 0x481   : > { %4903 = vst [vmem:[#allocation34_spill] sm:$0xff] %v4069_v63  ;;  %v1335_v53 = vadd.s32 %v1334_v45, %v1332_v36  ;;  %v4076_v26 = vadd.f32 %v1485_v10, %v3903_v3  ;;  %v4079_v56 = vsel %vm1404_vm10, 1e+30, %v4906_v2  ;;  %v2348_v61 = vsel %vm1404_vm10, 1.0, %v4877_v55  ;;  %v1361_v63 = vpop.xlane.xlu1 %1360  ;;  %v1346_v36 = vpop.xlane.xlu0 %1345  ;;  %v4913_v2 = vld [vmem:[#allocation35_spill] sm:$0xff] }
 0x482   : > { %v1393_v33 = vcvt.f32.s32 %v3762_v40  ;;  %v1320_v5 = vadd.s32 %v1319_v12, %v1317_v62  ;;  %v1564_v21 = vsel %vm4907_vm11, %v4079_v56, inf  ;;  %v1484_v15 = vmul.f32 %v3958_v29, %v2348_v61 }
 0x483   : > { %4905 = vst [vmem:[#allocation48_spill] sm:$0xff] %v4076_v26  ;;  %v1349_v38 = vshll.u32 %v1348_v42, 16  ;;  %v1378_v45 = vcvt.f32.s32 %v3766_v24  ;;  %v1362_v50 = vcvt.f32.s32 %v1361_v63  ;;  %1565 = vmin.xlane.f32.xlu0 %v1564_v21  ;;  %vm1407_vm12 = vcmp.eq.s32.totalorder %v3016_v48, %v1335_v53  ;;  %v4911_v63 = vld [vmem:[#allocation38_spill] sm:$0xff] }
 0x484   : > { %v4089_v3 = vadd.f32 %v1484_v15, %v3906_v57  ;;  %v4092_v40 = vsel %vm1407_vm12, 1e+30, %v4909_v59  ;;  %v2351_v27 = vsel %vm1407_vm12, 1.0, %v4877_v55  ;;  %vm1406_vm13 = vcmp.eq.s32.totalorder %v3016_v48, %v1320_v5  ;;  %vm4931_vm12 = vmmov %vm4915_vm0 }
 0x485   : > { %v1365_v10 = vadd.s32 %v1364_v52, %v1362_v50  ;;  %v1347_v12 = vcvt.f32.s32 %v1346_v36  ;;  %v1573_v24 = vsel %vm4910_vm14, %v4092_v40, inf  ;;  %v1487_v42 = vmul.f32 %v3965_v37, %v2351_v27  ;;  %v1391_v53 = vpop.xlane.xlu1 %1390  ;;  %v4916_v36 = vld [vmem:[#allocation40_spill] sm:$0xff] }
 0x486   : > { %4908 = vst [vmem:[#allocation36_spill] sm:$0xff] %v4089_v3  ;;  %vm4912_vm15 = vcmp.eq.s32.totalorder %v3016_v48, %v4911_v63  ;;  %v1394_v62 = vshll.u32 %v1393_v33, 16  ;;  %1574 = vmin.xlane.f32.xlu1 %v1573_v24  ;;  %v4104_v61 = vsel %vm1406_vm13, 1e+30, %v4913_v2  ;;  %v2350_v5 = vsel %vm1406_vm13, 1.0, %v4877_v55  ;;  %v1376_v24 = vpop.xlane.xlu0 %1375  ;;  %vm4932_vm13 = vmmov %vm4915_vm0  ;;  %v4945_v3 = vld [vmem:[#allocation9_spill] sm:$0xff] }
 0x487   : > { %v2339_v57 = vsel %vm4912_vm15, 1.0, %v4877_v55  ;;  %v1350_v52 = vadd.s32 %v1349_v38, %v1347_v12  ;;  %v4108_v21 = vadd.f32 %v1487_v42, %v3912_v43  ;;  %v1392_v15 = vcvt.f32.s32 %v1391_v53  ;;  %v4918_v43 = vld [vmem:[#allocation37_spill] sm:$0xff]  ;;  %vm4933_vm15 = vmmov %vm4915_vm0 }
 0x488   : > { %v1570_v50 = vsel %vm4915_vm0, %v4104_v61, inf  ;;  %vm4917_vm1 = vcmp.eq.s32.totalorder %v3016_v48, %v4916_v36  ;;  %v1379_v59 = vshll.u32 %v1378_v45, 16  ;;  %v1486_v27 = vmul.f32 %v3973_v0, %v2350_v5 }
 0x489   : > { %4914 = vst [vmem:[#allocation17_spill] sm:$0xff] %v4108_v21  ;;  %v2338_v33 = vsel %vm4917_vm1, 1.0, %v4877_v55  ;;  %1571 = vmin.xlane.f32.xlu0 %v1570_v50  ;;  %vm1409_vm3 = vcmp.eq.s32.totalorder %v3016_v48, %v1365_v10  ;;  %v1395_v38 = vadd.s32 %v1394_v62, %v1392_v15  ;;  %v1377_v12 = vcvt.f32.s32 %v1376_v24  ;;  %v4921_v10 = vld [vmem:[#allocation39_spill] sm:$0xff]  ;;  %vm4934_vm1 = vmmov %vm4920_vm5 }
 0x48a   : > { %v4119_v42 = vsel %vm1409_vm3, 1e+30, %v4918_v43  ;;  %v2353_v63 = vsel %vm1409_vm3, 1.0, %v4877_v55  ;;  %v4123_v53 = vadd.f32 %v1486_v27, %v3942_v14  ;;  %vm1408_vm2 = vcmp.eq.s32.totalorder %v3016_v48, %v1350_v52  ;;  %v4924_v27 = vld [vmem:[#allocation41_spill] sm:$0xff]  ;;  %v4927_v43 = vld [vmem:[#allocation42_spill] sm:$0xff] }
 0x48b   : > { %v1579_v2 = vsel %vm4920_vm5, %v4119_v42, inf  ;;  %v1489_v45 = vmul.f32 %v3978_v4, %v2353_v63  ;;  %v1380_v5 = vadd.s32 %v1379_v59, %v1377_v12  ;;  %v4130_v62 = vsel %vm1408_vm2, 1e+30, %v4921_v10 }
 0x48c   : > { %4919 = vst [vmem:[#allocation18_spill] sm:$0xff] %v4123_v53  ;;  %1580 = vmin.xlane.f32.xlu1 %v1579_v2  ;;  %v2352_v15 = vsel %vm1408_vm2, 1.0, %v4877_v55  ;;  %vm1411_vm4 = vcmp.eq.s32.totalorder %v3016_v48, %v1395_v38  ;;  %v1576_v14 = vsel %vm4923_vm6, %v4130_v62, inf  ;;  %v1027_v52 = vmul.f32 %v3881_v22, %v2339_v57  ;;  %vm4935_vm2 = vmmov %vm4934_vm1 }
 0x48d   : > { %v4135_v50 = vadd.f32 %v1489_v45, %v3947_v13  ;;  %v1488_v36 = vmul.f32 %v3986_v60, %v2352_v15  ;;  %v4141_v24 = vsel %vm1411_vm4, 1e+30, %v4924_v27  ;;  %1577 = vmin.xlane.f32.xlu0 %v1576_v14  ;;  %v2355_v12 = vsel %vm1411_vm4, 1.0, %v4877_v55  ;;  %vm4936_vm4 = vmmov %vm4934_vm1 }
 0x48e   : > { %v1585_v59 = vsel %vm4925_vm7, %v4141_v24, inf  ;;  %vm1410_vm8 = vcmp.eq.s32.totalorder %v3016_v48, %v1380_v5  ;;  %v1491_v38 = vmul.f32 %v3999_v28, %v2355_v12  ;;  %v1026_v57 = vmul.f32 %v3891_v9, %v2338_v33  ;;  %vm4937_vm7 = vmmov %vm4934_vm1  ;;  %v4950_v28 = vld [vmem:[#allocation11_spill] sm:$0xff] }
 0x48f   : > { %4922 = vst [vmem:[#allocation19_spill] sm:$0xff] %v4135_v50  ;;  %v4149_v13 = vadd.f32 %v1488_v36, %v3950_v54  ;;  %v4153_v63 = vsel %vm1410_vm8, 1e+30, %v4927_v43  ;;  %v2354_v2 = vsel %vm1410_vm8, 1.0, %v4877_v55 }
 0x490   : > { %1586 = vmin.xlane.f32.xlu1 %v1585_v59  ;;  %v1582_v45 = vsel %vm4928_vm9, %v4153_v63, inf  ;;  %v1490_v10 = vmul.f32 %v4006_v6, %v2354_v2  ;;  %v4160_v15 = vadd.f32 %v1491_v38, %v1027_v52  ;;  %vm4939_vm9 = vmmov %vm4934_vm1 }
 0x491   : > { %4926 = vst [vmem:[#allocation20_spill] sm:$0xff] %v4149_v13  ;;  %1583 = vmin.xlane.f32.xlu0 %v1582_v45 }
 0x492   : > { %4929 = vst [vmem:[#allocation21_spill] sm:$0xff] %v4160_v15  ;;  %v4162_v54 = vadd.f32 %v1490_v10, %v1026_v57 }
 0x494   : > { %4930 = vst [vmem:[#allocation23_spill] sm:$0xff] %v4162_v54 }
 0x4fb   : > { %v1545_v5 = vpop.xlane.xlu1 %1544 }
 0x4fc   : > { %vm1589_vm10 = vcmp.eq.f32.partialorder %v3961_v18, %v1545_v5  ;;  %v1877_v14 = vadd.f32 1e-08, %v1545_v5  ;;  %v1542_v36 = vpop.xlane.xlu0 %1541 }
 0x4fd   : > { %v1605_v27 = vsel %vm1589_vm10, %v3016_v48, 8  ;;  %vm1588_vm11 = vcmp.eq.f32.partialorder %v3971_v34, %v1542_v36  ;;  %v1876_v33 = vadd.f32 1e-08, %v1542_v36 }
 0x4fe   : > { %v4168_v59 = vsel %vm4931_vm12, %v1605_v27, 2147483647  ;;  %2643 = vrcp.f32 %v1877_v14  ;;  %v1604_v52 = vsel %vm1588_vm11, %v3016_v48, 8  ;;  %vm4941_vm11 = vmmov %vm4934_vm1 }
 0x4ff   : > { %v4172_v12 = vsel %vm4932_vm13, %v1604_v52, 2147483647  ;;  %2645 = vrcp.f32 %v1876_v33  ;;  %v1551_v38 = vpop.xlane.xlu1 %1550  ;;  %v1637_v18 = vshra.s32 %v4168_v59, 16  ;;  %vm4944_vm13 = vmmov %vm4934_vm1 }
 0x500   : > { %vm1591_vm14 = vcmp.eq.f32.partialorder %v3989_v11, %v1551_v38  ;;  %v1879_v43 = vadd.f32 1e-08, %v1551_v38  ;;  %v1622_v2 = vshra.s32 %v4172_v12, 16 }
 0x501   : > { %v1607_v34 = vsel %vm1591_vm14, %v3016_v48, 8  ;;  %v1548_v57 = vpop.xlane.xlu0 %1547  ;;  %v4178_v45 = vcvt.s32.f32 %v1637_v18 }
 0x502   : > { %v4181_v10 = vsel %vm4933_vm15, %v1607_v34, 2147483647  ;;  %2647 = vrcp.f32 %v1879_v43  ;;  %vm1590_vm0 = vcmp.eq.f32.partialorder %v4003_v58, %v1548_v57  ;;  %v1878_v5 = vadd.f32 1e-08, %v1548_v57  ;;  %vm4946_vm15 = vmmov %vm4934_vm1 }
 0x503   : > { %v1606_v14 = vsel %vm1590_vm0, %v3016_v48, 8  ;;  %1640 = vmin.xlane.f32.xlu1 %v4178_v45  ;;  %v4186_v11 = vcvt.s32.f32 %v1622_v2  ;;  %v1667_v36 = vshra.s32 %v4181_v10, 16  ;;  %v1509_v43 = vadd.f32 %v3900_v47, %v3784_v1 }
 0x504   : > { %v4190_v27 = vsel %vm4934_vm1, %v1606_v14, 2147483647  ;;  %2649 = vrcp.f32 %v1878_v5  ;;  %v1557_v33 = vpop.xlane.xlu1 %1556  ;;  %v1508_v1 = vadd.f32 %v3909_v44, %v3787_v19 }
 0x505   : > { %vm1593_vm3 = vcmp.eq.f32.partialorder %v4020_v49, %v1557_v33  ;;  %v1881_v52 = vadd.f32 1e-08, %v1557_v33  ;;  %1625 = vmin.xlane.f32.xlu0 %v4186_v11  ;;  %v1554_v58 = vpop.xlane.xlu0 %1553  ;;  %v4194_v38 = vcvt.s32.f32 %v1667_v36  ;;  %v1652_v18 = vshra.s32 %v4190_v27, 16 }
 0x506   : > { %v1609_v2 = vsel %vm1593_vm3, %v3016_v48, 8  ;;  %vm1592_vm5 = vcmp.eq.f32.partialorder %v4028_v23, %v1554_v58  ;;  %v1880_v34 = vadd.f32 1e-08, %v1554_v58 }
 0x507   : > { %v4202_v57 = vsel %vm4935_vm2, %v1609_v2, 2147483647  ;;  %2651 = vrcp.f32 %v1881_v52  ;;  %v1608_v49 = vsel %vm1592_vm5, %v3016_v48, 8  ;;  %1670 = vmin.xlane.f32.xlu1 %v4194_v38  ;;  %v4206_v5 = vcvt.s32.f32 %v1652_v18  ;;  %vm4953_vm5 = vmmov %vm4934_vm1 }
 0x508   : > { %v4208_v14 = vpop.eup %2643  ;;  %v4213_v47 = vsel %vm4936_vm4, %v1608_v49, 2147483647  ;;  %2653 = vrcp.f32 %v1880_v34  ;;  %v1563_v23 = vpop.xlane.xlu1 %1562  ;;  %v1697_v36 = vshra.s32 %v4202_v57, 16  ;;  %v1511_v34 = vadd.f32 %v3916_v25, %v3790_v20  ;;  %vm4955_vm4 = vmmov %vm4934_vm1 }
 0x509   : > { %v4216_v33 = vpop.eup %2645  ;;  %v4219_v52 = vadd.f32 %v4208_v14, %v1509_v43  ;;  %vm1595_vm6 = vcmp.eq.f32.partialorder %v4040_v35, %v1563_v23  ;;  %v1883_v58 = vadd.f32 1e-08, %v1563_v23  ;;  %1655 = vmin.xlane.f32.xlu0 %v4206_v5  ;;  %v1682_v18 = vshra.s32 %v4213_v47, 16 }
 0x50a   : > { %v4225_v19 = vadd.f32 %v4216_v33, %v1508_v1  ;;  %v1611_v44 = vsel %vm1595_vm6, %v3016_v48, 8  ;;  %v4228_v2 = vcvt.s32.f32 %v1697_v36  ;;  %v4938_v36 = vld [vmem:[#allocation6_spill] sm:$0xff] }
 0x50b   : > { %v4233_v43 = vsel %vm4937_vm7, %v1611_v44, 2147483647  ;;  %v1560_v49 = vpop.xlane.xlu0 %1559  ;;  %v4235_v35 = vcvt.s32.f32 %v1682_v18  ;;  %v1510_v15 = vadd.f32 %v3927_v30, %v4938_v36  ;;  %2655 = vrcp.f32 %v1883_v58  ;;  %v4940_v36 = vld [vmem:[#allocation7_spill] sm:$0xff]  ;;  %vm4957_vm7 = vmmov %vm4934_vm1 }
 0x50c   : > { %v4237_v23 = vpop.eup %2647  ;;  %vm1594_vm8 = vcmp.eq.f32.partialorder %v4056_v46, %v1560_v49  ;;  %v1882_v54 = vadd.f32 1e-08, %v1560_v49  ;;  %1700 = vmin.xlane.f32.xlu1 %v4228_v2  ;;  %v1727_v1 = vshra.s32 %v4233_v43, 16  ;;  %v1513_v13 = vadd.f32 %v3935_v8, %v4940_v36 }
 0x50d   : > { %v4245_v20 = vadd.f32 %v4237_v23, %v1511_v34  ;;  %v1610_v25 = vsel %vm1594_vm8, %v3016_v48, 8  ;;  %v1569_v18 = vpop.xlane.xlu1 %1568  ;;  %1685 = vmin.xlane.f32.xlu0 %v4235_v35 }
 0x50e   : > { %v4249_v44 = vpop.eup %2649  ;;  %v4252_v46 = vsel %vm4939_vm9, %v1610_v25, 2147483647  ;;  %2657 = vrcp.f32 %v1882_v54  ;;  %vm1597_vm10 = vcmp.eq.f32.partialorder %v4065_v51, %v1569_v18  ;;  %v1885_v49 = vadd.f32 1e-08, %v1569_v18  ;;  %v4942_v51 = vld [vmem:[#allocation8_spill] sm:$0xff]  ;;  %vm4961_vm9 = vmmov %vm4934_vm1 }
 0x50f   : > { %v4256_v30 = vadd.f32 %v4249_v44, %v1510_v15  ;;  %v1613_v34 = vsel %vm1597_vm10, %v3016_v48, 8  ;;  %v4259_v58 = vcvt.s32.f32 %v1727_v1  ;;  %v1712_v54 = vshra.s32 %v4252_v46, 16 }
 0x510   : > { %v4264_v50 = vsel %vm4941_vm11, %v1613_v34, 2147483647  ;;  %2659 = vrcp.f32 %v1885_v49  ;;  %v1566_v25 = vpop.xlane.xlu0 %1565  ;;  %v1512_v15 = vadd.f32 %v3939_v17, %v4942_v51 }
 0x511   : > { %v4267_v53 = vpop.eup %2651  ;;  %vm1596_vm12 = vcmp.eq.f32.partialorder %v4079_v56, %v1566_v25  ;;  %v1884_v18 = vadd.f32 1e-08, %v1566_v25  ;;  %1730 = vmin.xlane.f32.xlu1 %v4259_v58  ;;  %v1757_v1 = vshra.s32 %v4264_v50, 16  ;;  %v4280_v36 = vcvt.s32.f32 %v1712_v54 }
 0x512   : > { %v4274_v8 = vpop.eup %2653  ;;  %v4277_v34 = vadd.f32 %v4267_v53, %v1513_v13  ;;  %v1612_v49 = vsel %vm1596_vm12, %v3016_v48, 8  ;;  %v1515_v54 = vadd.f32 %v3944_v39, %v4945_v3 }
 0x513   : > { %4943 = vst [vmem:[#allocation25_spill] sm:$0xff] %v4274_v8  ;;  %v4283_v21 = vadd.f32 %v4274_v8, %v1512_v15  ;;  %v4286_v17 = vsel %vm4944_vm13, %v1612_v49, 2147483647  ;;  %2661 = vrcp.f32 %v1884_v18  ;;  %v1575_v56 = vpop.xlane.xlu1 %1574  ;;  %v4288_v25 = vcvt.s32.f32 %v1757_v1  ;;  %1715 = vmin.xlane.f32.xlu0 %v4280_v36  ;;  %v4948_v49 = vld [vmem:[#allocation10_spill] sm:$0xff] }
 0x514   : > { %vm1599_vm14 = vcmp.eq.f32.partialorder %v4092_v40, %v1575_v56  ;;  %v1887_v51 = vadd.f32 1e-08, %v1575_v56  ;;  %v1742_v13 = vshra.s32 %v4286_v17, 16  ;;  %v1514_v56 = vadd.f32 %v3952_v31, %v4948_v49 }
 0x515   : > { %v1615_v15 = vsel %vm1599_vm14, %v3016_v48, 8  ;;  %1760 = vmin.xlane.f32.xlu1 %v4288_v25  ;;  %v4301_v1 = vpop.eup %2655 }
 0x516   : > { %v1572_v26 = vpop.xlane.xlu0 %1571  ;;  %v4298_v18 = vsel %vm4946_vm15, %v1615_v15, 2147483647  ;;  %2663 = vrcp.f32 %v1887_v51  ;;  %4947 = vst [vmem:[#allocation27_spill] sm:$0xff] %v4301_v1  ;;  %v4306_v39 = vcvt.s32.f32 %v1742_v13  ;;  %v1517_v15 = vadd.f32 %v3955_v7, %v4950_v28 }
 0x517   : > { %vm1598_vm0 = vcmp.eq.f32.partialorder %v4104_v61, %v1572_v26  ;;  %v1886_v40 = vadd.f32 1e-08, %v1572_v26  ;;  %v1787_v3 = vshra.s32 %v4298_v18, 16  ;;  %v4314_v51 = vadd.f32 %v4301_v1, %v1515_v54  ;;  %v4952_v54 = vld [vmem:[#allocation12_spill] sm:$0xff] }
 0x518   : > { %v1614_v6 = vsel %vm1598_vm0, %v3016_v48, 8  ;;  %v4309_v9 = vpop.eup %2657  ;;  %1745 = vmin.xlane.f32.xlu0 %v4306_v39 }
 0x519   : > { %4949 = vst [vmem:[#allocation29_spill] sm:$0xff] %v4309_v9  ;;  %v4317_v26 = vsel %vm4934_vm1, %v1614_v6, 2147483647  ;;  %2665 = vrcp.f32 %v1886_v40  ;;  %v1581_v61 = vpop.xlane.xlu1 %1580  ;;  %v4320_v31 = vadd.f32 %v4309_v9, %v1514_v56  ;;  %v4324_v49 = vcvt.s32.f32 %v1787_v3 }
 0x51a   : > { %vm1601_vm3 = vcmp.eq.f32.partialorder %v4119_v42, %v1581_v61  ;;  %v1889_v13 = vadd.f32 1e-08, %v1581_v61  ;;  %v4326_v22 = vpop.eup %2659  ;;  %v1578_v28 = vpop.xlane.xlu0 %1577  ;;  %v1772_v6 = vshra.s32 %v4317_v26, 16  ;;  %v1516_v40 = vadd.f32 %v3958_v29, %v4952_v54 }
 0x51b   : > { %4951 = vst [vmem:[#allocation31_spill] sm:$0xff] %v4326_v22  ;;  %v1617_v7 = vsel %vm1601_vm3, %v3016_v48, 8  ;;  %v4333_v56 = vadd.f32 %v4326_v22, %v1517_v15  ;;  %vm1600_vm2 = vcmp.eq.f32.partialorder %v4130_v62, %v1578_v28  ;;  %1790 = vmin.xlane.f32.xlu1 %v4324_v49  ;;  %v1888_v61 = vadd.f32 1e-08, %v1578_v28  ;;  %v4956_v28 = vld [vmem:[#allocation13_spill] sm:$0xff] }
 0x51c   : > { %v4336_v42 = vsel %vm4953_vm5, %v1617_v7, 2147483647  ;;  %2667 = vrcp.f32 %v1889_v13  ;;  %v1616_v3 = vsel %vm1600_vm2, %v3016_v48, 8  ;;  %v4343_v32 = vcvt.s32.f32 %v1772_v6 }
 0x51d   : > { %v4341_v9 = vpop.xlane.xlu1 %1586  ;;  %v4345_v1 = vpop.eup %2661  ;;  %v4348_v29 = vsel %vm4955_vm4, %v1616_v3, 2147483647  ;;  %2669 = vrcp.f32 %v1888_v61  ;;  %v1817_v7 = vshra.s32 %v4336_v42, 16  ;;  %v1519_v6 = vadd.f32 %v3965_v37, %v4956_v28 }
 0x51e   : > { %4954 = vst [vmem:[#allocation33_spill] sm:$0xff] %v4345_v1  ;;  %vm1603_vm6 = vcmp.eq.f32.partialorder %v4141_v24, %v4341_v9  ;;  %v4353_v62 = vadd.f32 %v4345_v1, %v1516_v40  ;;  %1775 = vmin.xlane.f32.xlu0 %v4343_v32  ;;  %v4357_v13 = vpop.xlane.xlu0 %1583  ;;  %v1802_v61 = vshra.s32 %v4348_v29, 16  ;;  %v4959_v1 = vld [vmem:[#allocation14_spill] sm:$0xff]  ;;  %2671 = vrcp.f32 %v4219_v52 }
 0x51f   : > { %v1619_v15 = vsel %vm1603_vm6, %v3016_v48, 8  ;;  %vm1602_vm8 = vcmp.eq.f32.partialorder %v4153_v63, %v4357_v13  ;;  %v4370_v3 = vcvt.s32.f32 %v1817_v7  ;;  %v1518_v22 = vadd.f32 %v3973_v0, %v4959_v1 }
 0x520   : > { %v4363_v54 = vsel %vm4957_vm7, %v1619_v15, 2147483647  ;;  %v4367_v24 = vpop.eup %2663  ;;  %v1618_v40 = vsel %vm1602_vm8, %v3016_v48, 8  ;;  %v4385_v28 = vcvt.s32.f32 %v1802_v61  ;;  %v4966_v61 = vld [vmem:[#allocation16_spill] sm:$0xff]  ;;  %2673 = vrcp.f32 %v4225_v19 }
 0x521   : > { %4958 = vst [vmem:[#allocation38_spill] sm:$0xff] %v4367_v24  ;;  %v4376_v41 = vadd.f32 %v4367_v24, %v1519_v6  ;;  %v4379_v37 = vsel %vm4961_vm9, %v1618_v40, 2147483647  ;;  %v1847_v15 = vshra.s32 %v4363_v54, 16  ;;  %1820 = vmin.xlane.f32.xlu1 %v4370_v3  ;;  %v4964_v6 = vld [vmem:[#allocation15_spill] sm:$0xff]  ;;  %2675 = vrcp.f32 %v4245_v20 }
 0x522   : > { %v1832_v7 = vshra.s32 %v4379_v37, 16  ;;  %1805 = vmin.xlane.f32.xlu0 %v4385_v28  ;;  %v1521_v40 = vadd.f32 %v3978_v4, %v4964_v6  ;;  %v1621_v4 = vand.u32 65535, %v4172_v12  ;;  %2677 = vrcp.f32 %v4256_v30 }
 0x523   : > { %4960 = vst [vmem:[#allocation35_spill] sm:$0xff] %v4376_v41  ;;  %v4382_v63 = vpop.eup %2665  ;;  %v4391_v0 = vcvt.s32.f32 %v1847_v15  ;;  %v1520_v41 = vadd.f32 %v3986_v60, %v4966_v61  ;;  %2679 = vrcp.f32 %v4277_v34  ;;  %v1891_v52 = vadd.f32 1e-08, %v4341_v9 }
 0x524   : > { %4962 = vst [vmem:[#allocation40_spill] sm:$0xff] %v4382_v63  ;;  %v4389_v8 = vadd.f32 %v4382_v63, %v1518_v22  ;;  %v4394_v1 = vcvt.s32.f32 %v1832_v7  ;;  %v1636_v7 = vand.u32 65535, %v4168_v59  ;;  %v1623_v61 = vcvt.s32.f32 %v1621_v4 }
 0x525   : > { %1850 = vmin.xlane.f32.xlu1 %v4391_v0  ;;  %2681 = vrcp.f32 %v4283_v21 }
 0x526   : > { %4963 = vst [vmem:[#allocation37_spill] sm:$0xff] %v4389_v8  ;;  %v4398_v24 = vpop.eup %2667  ;;  %1835 = vmin.xlane.f32.xlu0 %v4394_v1  ;;  %v1638_v63 = vcvt.s32.f32 %v1636_v7  ;;  %v1666_v8 = vand.u32 65535, %v4181_v10  ;;  %2683 = vrcp.f32 %v4314_v51 }
 0x527   : > { %4965 = vst [vmem:[#allocation39_spill] sm:$0xff] %v4398_v24  ;;  %v4404_v16 = vadd.f32 %v4398_v24, %v1521_v40  ;;  %v4406_v22 = vpop.eup %2669  ;;  %v1651_v24 = vand.u32 65535, %v4190_v27  ;;  %v1681_v27 = vand.u32 65535, %v4213_v47  ;;  %2685 = vrcp.f32 %v4320_v31 }
 0x528   : > { %v4410_v15 = vadd.f32 %v4406_v22, %v1520_v41  ;;  %v1668_v12 = vcvt.s32.f32 %v1666_v8  ;;  %2687 = vrcp.f32 %v4333_v56 }
 0x529   : > { %v1653_v7 = vcvt.s32.f32 %v1651_v24  ;;  %v1711_v24 = vand.u32 65535, %v4252_v46  ;;  %v1741_v46 = vand.u32 65535, %v4286_v17  ;;  %2689 = vrcp.f32 %v1891_v52 }
 0x52a   : > { %2691 = vrcp.f32 %v4353_v62 }
 0x590   : > { %v4414_v6 = vpop.xlane.xlu1 %1640 }
 0x591   : > { %vm1642_vm10 = vcmp.eq.f32.partialorder %v4178_v45, %v4414_v6  ;;  %v1696_v45 = vand.u32 65535, %v4202_v57  ;;  %v1683_v57 = vcvt.s32.f32 %v1681_v27 }
 0x592   : > { %v4419_v60 = vpop.xlane.xlu0 %1625  ;;  %v1643_v40 = vsel %vm1642_vm10, %v1638_v63, inf  ;;  %vm2789_vm10 = vmmov 0  }
 0x593   : > { %vm1627_vm11 = vcmp.eq.f32.partialorder %v4186_v11, %v4419_v60  ;;  %1644 = vmin.xlane.f32.xlu1 %v1643_v40  ;;  %v1698_v8 = vcvt.s32.f32 %v1696_v45  ;;  %v1726_v40 = vand.u32 65535, %v4233_v43  ;;  %v1713_v43 = vcvt.s32.f32 %v1711_v24  ;;  %2486 = vmatprep.mubr.msk.f32.mxu1 %vm2789_vm10, %v4877_v55 }
 0x594   : > { %v4424_v41 = vpop.xlane.xlu1 %1670  ;;  %v1628_v59 = vsel %vm1627_vm11, %v1623_v61, inf }
 0x595   : > { %vm1672_vm12 = vcmp.eq.f32.partialorder %v4194_v38, %v4424_v41  ;;  %1629 = vmin.xlane.f32.xlu0 %v1628_v59  ;;  %v1728_v59 = vcvt.s32.f32 %v1726_v40 }
 0x596   : > { %v4429_v10 = vpop.xlane.xlu0 %1655  ;;  %v1673_v63 = vsel %vm1672_vm12, %v1668_v12, inf  ;;  %v1756_v12 = vand.u32 65535, %v4264_v50 }
 0x597   : > { %vm1657_vm13 = vcmp.eq.f32.partialorder %v4206_v5, %v4429_v10  ;;  %1674 = vmin.xlane.f32.xlu1 %v1673_v63  ;;  %v1662_v19 = vcvt.f32.s32 %v4429_v10 }
 0x598   : > { %v1658_v11 = vsel %vm1657_vm13, %v1653_v7, inf  ;;  %v1758_v63 = vcvt.s32.f32 %v1756_v12 }
 0x599   : > { %v4434_v4 = vpop.xlane.xlu1 %1700  ;;  %1659 = vmin.xlane.f32.xlu0 %v1658_v11  ;;  %v1743_v11 = vcvt.s32.f32 %v1741_v46  ;;  %v1663_v51 = vshll.u32 %v1662_v19, 16 }
 0x59a   : > { %vm1702_vm14 = vcmp.eq.f32.partialorder %v4228_v2, %v4434_v4  ;;  %v4438_v38 = vpop.xlane.xlu0 %1685  ;;  %v1707_v9 = vcvt.f32.s32 %v4434_v4 }
 0x59b   : > { %vm1687_vm15 = vcmp.eq.f32.partialorder %v4235_v35, %v4438_v38  ;;  %v1703_v47 = vsel %vm1702_vm14, %v1698_v8, inf }
 0x59c   : > { %1704 = vmin.xlane.f32.xlu1 %v1703_v47  ;;  %v1688_v5 = vsel %vm1687_vm15, %v1683_v57, inf  ;;  %v1816_v47 = vand.u32 65535, %v4336_v42  ;;  %v1831_v42 = vand.u32 65535, %v4379_v37  ;;  %vm4969_vm15 = vcmask 64512  }
 0x59d   : > { %1689 = vmin.xlane.f32.xlu0 %v1688_v5 }
 0x59e   : > { %v4444_v61 = vpop.xlane.xlu1 %1730  ;;  %v1818_v24 = vcvt.s32.f32 %v1816_v47  ;;  %v1890_v47 = vadd.f32 1e-08, %v4357_v13 }
 0x59f   : > { %vm1732_vm0 = vcmp.eq.f32.partialorder %v4259_v58, %v4444_v61  ;;  %v1786_v58 = vand.u32 65535, %v4298_v18 }
 0x5a0   : > { %v1733_v2 = vsel %vm1732_vm0, %v1728_v59, inf  ;;  %v4449_v45 = vpop.xlane.xlu0 %1715  ;;  %2693 = vrcp.f32 %v1890_v47 }
 0x5a1   : > { %1734 = vmin.xlane.f32.xlu1 %v1733_v2  ;;  %vm1717_vm1 = vcmp.eq.f32.partialorder %v4280_v36, %v4449_v45  ;;  %v1771_v36 = vand.u32 65535, %v4317_v26  ;;  %v1788_v57 = vcvt.s32.f32 %v1786_v58  ;;  %v1801_v26 = vand.u32 65535, %v4348_v29 }
 0x5a2   : > { %v4453_v35 = vpop.xlane.xlu1 %1760  ;;  %v1718_v50 = vsel %vm1717_vm1, %v1713_v43, inf  ;;  %v1722_v52 = vcvt.f32.s32 %v4449_v45  ;;  %vm4971_vm1 = vmmov %vm4969_vm15  ;;  %v4972_v45 = vld [vmem:[#allocation45_spill] sm:$0xff] }
 0x5a3   : > { %vm1762_vm3 = vcmp.eq.f32.partialorder %v4288_v25, %v4453_v35  ;;  %1719 = vmin.xlane.f32.xlu0 %v1718_v50  ;;  %v1773_v18 = vcvt.s32.f32 %v1771_v36  ;;  %v1803_v2 = vcvt.s32.f32 %v1801_v26  ;;  %v2672_v36 = vpop.eup %2671 }
 0x5a4   : > { %v1763_v7 = vsel %vm1762_vm3, %v1758_v63, inf  ;;  %v1833_v63 = vcvt.s32.f32 %v1831_v42  ;;  %v2674_v31 = vpop.eup %2673 }
 0x5a5   : > { %1764 = vmin.xlane.f32.xlu1 %v1763_v7  ;;  %v4459_v27 = vpop.xlane.xlu0 %1745  ;;  %v1677_v7 = vcvt.f32.s32 %v4424_v41 }
 0x5a6   : > { %vm1747_vm5 = vcmp.eq.f32.partialorder %v4306_v39, %v4459_v27 }
 0x5a7   : > { %v1748_v17 = vsel %vm1747_vm5, %v1743_v11, inf  ;;  %v1678_v21 = vshll.u32 %v1677_v7, 16  ;;  %vm4973_vm5 = vmmov %vm4971_vm1 }
 0x5a8   : > { %v4464_v8 = vpop.xlane.xlu1 %1790  ;;  %1749 = vmin.xlane.f32.xlu0 %v1748_v17 }
 0x5a9   : > { %vm1792_vm2 = vcmp.eq.f32.partialorder %v4324_v49, %v4464_v8  ;;  %v1846_v49 = vand.u32 65535, %v4363_v54 }
 0x5aa   : > { %v1793_v25 = vsel %vm1792_vm2, %v1788_v57, inf  ;;  %vm4976_vm2 = vmmov %vm4971_vm1 }
 0x5ab   : > { %v4468_v40 = vpop.xlane.xlu0 %1775  ;;  %1794 = vmin.xlane.f32.xlu1 %v1793_v25  ;;  %v1848_v43 = vcvt.s32.f32 %v1846_v49 }
 0x5ac   : > { %vm1777_vm4 = vcmp.eq.f32.partialorder %v4343_v32, %v4468_v40 }
 0x5ad   : > { %v1778_v39 = vsel %vm1777_vm4, %v1773_v18, inf  ;;  %v2676_v18 = vpop.eup %2675 }
 0x5ae   : > { %1779 = vmin.xlane.f32.xlu0 %v1778_v39  ;;  %v4474_v5 = vpop.xlane.xlu1 %1820  ;;  %v1692_v39 = vcvt.f32.s32 %v4438_v38  ;;  %v2678_v4 = vpop.eup %2677 }
 0x5af   : > { %vm1822_vm6 = vcmp.eq.f32.partialorder %v4370_v3, %v4474_v5  ;;  %v4479_v59 = vpop.xlane.xlu0 %1805  ;;  %v2680_v42 = vpop.eup %2679 }
 0x5b0   : > { %v1823_v12 = vsel %vm1822_vm6, %v1818_v24, inf  ;;  %vm1807_vm7 = vcmp.eq.f32.partialorder %v4385_v28, %v4479_v59  ;;  %v2788_v28 = vmov 0.0|0.0   ;;  %v4967_v24 = vld [vmem:[#allocation43_spill] sm:$0xff]  ;;  %v2682_v38 = vpop.eup %2681  ;;  %vm4980_vm6 = vmmov %vm4971_vm1 }
 0x5b1   : > { %1824 = vmin.xlane.f32.xlu1 %v1823_v12  ;;  %v1808_v29 = vsel %vm1807_vm7, %v1803_v2, inf  ;;  %2489 = vmatprep.subr.bf16.mxu1 %v2788_v28 }
 0x5b2   : > { %v4484_v32 = vpop.xlane.xlu1 %1850  ;;  %1809 = vmin.xlane.f32.xlu0 %v1808_v29  ;;  %v1708_v29 = vshll.u32 %v1707_v9, 16 }
 0x5b3   : > { %vm1852_vm8 = vcmp.eq.f32.partialorder %v4391_v0, %v4484_v32  ;;  %v4488_v54 = vpop.xlane.xlu0 %1835  ;;  %v1647_v0 = vcvt.f32.s32 %v4414_v6 }
 0x5b4   : > { %v1853_v3 = vsel %vm1852_vm8, %v1848_v43, inf  ;;  %vm1837_vm9 = vcmp.eq.f32.partialorder %v4394_v1, %v4488_v54  ;;  %v1632_v1 = vcvt.f32.s32 %v4419_v60  ;;  %v1737_v43 = vcvt.f32.s32 %v4444_v61 }
 0x5b5   : > { %1854 = vmin.xlane.f32.xlu1 %v1853_v3  ;;  %v1838_v37 = vsel %vm1837_vm9, %v1833_v63, inf  ;;  %v1648_v50 = vshll.u32 %v1647_v0, 16  ;;  %vm4982_vm9 = vmmov %vm4971_vm1 }
 0x5b6   : > { %1839 = vmin.xlane.f32.xlu0 %v1838_v37  ;;  %v1633_v30 = vshll.u32 %v1632_v1, 16  ;;  %v4968_v37 = vld [vmem:[#allocation26_spill] sm:$0xff]  ;;  %vm4567_vm10 = vmpackc.low %vm4982_vm9, %vm4982_vm9 }
 0x620   : > { %v1645_v46 = vpop.xlane.xlu1 %1644 }
 0x621   : > { %v1646_v58 = vcvt.f32.s32 %v1645_v46  ;;  %v1693_v46 = vshll.u32 %v1692_v39, 16  ;;  %v4974_v39 = vld [vmem:[#allocation46_spill] sm:$0xff] }
 0x622   : > { %v1630_v20 = vpop.xlane.xlu0 %1629 }
 0x623   : > { %v1649_v6 = vadd.s32 %v1648_v50, %v1646_v58  ;;  %v1631_v60 = vcvt.f32.s32 %v1630_v20  ;;  %v4970_v20 = vld [vmem:[#allocation30_spill] sm:$0xff] }
 0x624   : > { %v1675_v34 = vpop.xlane.xlu1 %1674 }
 0x625   : > { %vm1861_vm11 = vcmp.eq.s32.totalorder %v3016_v48, %v1649_v6  ;;  %v1634_v41 = vadd.s32 %v1633_v30, %v1631_v60  ;;  %v1676_v11 = vcvt.f32.s32 %v1675_v34  ;;  %v1738_v60 = vshll.u32 %v1737_v43, 16 }
 0x626   : > { %v2357_v10 = vsel %vm1861_vm11, 1.0, %v4877_v55  ;;  %v1660_v17 = vpop.xlane.xlu0 %1659  ;;  %v1767_v34 = vcvt.f32.s32 %v4453_v35  ;;  %v1723_v35 = vshll.u32 %v1722_v52, 16  ;;  %vm4985_vm11 = vmmov %vm4971_vm1 }
 0x627   : > { %v1941_v57 = vmul.f32 %v4208_v14, %v2357_v10  ;;  %vm1860_vm12 = vcmp.eq.s32.totalorder %v3016_v48, %v1634_v41  ;;  %v1679_v56 = vadd.s32 %v1678_v21, %v1676_v11  ;;  %v1661_v25 = vcvt.f32.s32 %v1660_v17 }
 0x628   : > { %v2356_v26 = vsel %vm1860_vm12, 1.0, %v4877_v55  ;;  %vm4994_vm12 = vmmov %vm4971_vm1 }
 0x629   : > { %v1957_v49 = vadd.f32 %v1941_v57, %v4967_v24  ;;  %v1940_v12 = vmul.f32 %v4216_v33, %v2356_v26  ;;  %vm1863_vm13 = vcmp.eq.s32.totalorder %v3016_v48, %v1679_v56  ;;  %v1664_v14 = vadd.s32 %v1663_v51, %v1661_v25  ;;  %v1705_v2 = vpop.xlane.xlu1 %1704  ;;  %v4525_v33 = vpop.eup %2683  ;;  %v4975_v24 = vld [vmem:[#allocation25_spill] sm:$0xff] }
 0x62a   : > { %v2359_v62 = vsel %vm1863_vm13, 1.0, %v4877_v55  ;;  %v1706_v13 = vcvt.f32.s32 %v1705_v2  ;;  %v1690_v3 = vpop.xlane.xlu0 %1689  ;;  %v4528_v61 = vpop.eup %2685 }
 0x62b   : > { %v2005_v63 = vmul.f32 %v2672_v36, %v1957_v49  ;;  %v1956_v0 = vadd.f32 %v1940_v12, %v4968_v37  ;;  %v1943_v1 = vmul.f32 %v4237_v23, %v2359_v62  ;;  %vm1862_vm14 = vcmp.eq.s32.totalorder %v3016_v48, %v1664_v14  ;;  %v4534_v6 = vpop.eup %2687 }
 0x62c   : > { %v2358_v50 = vsel %vm1862_vm14, 1.0, %v4877_v55  ;;  %v1709_v7 = vadd.s32 %v1708_v29, %v1706_v13  ;;  %v1691_v58 = vcvt.f32.s32 %v1690_v3  ;;  %v4541_v10 = vpop.eup %2689  ;;  %v1768_v12 = vshll.u32 %v1767_v34, 16  ;;  %v4977_v29 = vld [vmem:[#allocation47_spill] sm:$0xff] }
 0x62d   : > { %2021 = vst.msk [vmem:[#allocation2 + $0x8] sm:$0xff] %vm4969_vm15, %v2005_v63  ;;  %v2004_v19 = vmul.f32 %v2674_v31, %v1956_v0  ;;  %v1959_v30 = vadd.f32 %v1943_v1, %v4970_v20  ;;  %v1942_v23 = vmul.f32 %v4249_v44, %v2358_v50  ;;  %v4547_v25 = vpop.eup %2691  ;;  %v1797_v14 = vcvt.f32.s32 %v4464_v8  ;;  %v4978_v13 = vld [vmem:[#allocation35_spill] sm:$0xff]  ;;  %vm4997_vm15 = vmmov %vm4971_vm1 }
 0x62e   : > { %vm1865_vm0 = vcmp.eq.s32.totalorder %v3016_v48, %v1709_v7  ;;  %v1694_v21 = vadd.s32 %v1693_v46, %v1691_v58  ;;  %v1735_v41 = vpop.xlane.xlu1 %1734  ;;  %2695 = vrcp.f32 %v4978_v13  ;;  %v4979_v3 = vld [vmem:[#allocation27_spill] sm:$0xff]  ;;  %v1782_v8 = vcvt.f32.s32 %v4468_v40  ;;  %v4981_v7 = vld [vmem:[#allocation32_spill] sm:$0xff] }
 0x62f   : > { %2020 = vst.msk [vmem:[#allocation2] sm:$0xff] %vm4971_vm1, %v2004_v19  ;;  %v2007_v11 = vmul.f32 %v2676_v18, %v1959_v30  ;;  %v1958_v36 = vadd.f32 %v1942_v23, %v4972_v45  ;;  %v2361_v51 = vsel %vm1865_vm0, 1.0, %v4877_v55  ;;  %v1736_v9 = vcvt.f32.s32 %v1735_v41  ;;  %v4987_v41 = vld [vmem:[#allocation31_spill] sm:$0xff]  ;;  %vm4998_vm0 = vmmov %vm4971_vm1 }
 0x630   : > { %v1945_v44 = vmul.f32 %v4267_v53, %v2361_v51  ;;  %vm1864_vm3 = vcmp.eq.s32.totalorder %v3016_v48, %v1694_v21  ;;  %v1720_v56 = vpop.xlane.xlu0 %1719  ;;  %v1752_v18 = vcvt.f32.s32 %v4459_v27  ;;  %v1798_v40 = vshll.u32 %v1797_v14, 16  ;;  %v4576_v51 = vpop.eup %2693  ;;  %vm5010_vm9 = vmmov %vm4998_vm0 }
 0x631   : > { %2023 = vst.msk [vmem:[#allocation2 + $0x18] sm:$0xff] %vm4973_vm5, %v2007_v11  ;;  %v2006_v17 = vmul.f32 %v2678_v4, %v1958_v36  ;;  %v2360_v31 = vsel %vm1864_vm3, 1.0, %v4877_v55  ;;  %v1739_v57 = vadd.s32 %v1738_v60, %v1736_v9  ;;  %v1721_v49 = vcvt.f32.s32 %v1720_v56  ;;  %v4988_v9 = vld [vmem:[#allocation22_spill] sm:$0xff]  ;;  %v4992_v56 = vld [vmem:[#allocation37_spill] sm:$0xff]  ;;  %vm5003_vm3 = vmmov %vm4998_vm0 }
 0x632   : > { %v1961_v26 = vadd.f32 %v1945_v44, %v4974_v39  ;;  %v1944_v47 = vmul.f32 %v4975_v24, %v2360_v31  ;;  %v1765_v53 = vpop.xlane.xlu1 %1764  ;;  %v1753_v1 = vshll.u32 %v1752_v18, 16  ;;  %v4989_v44 = vld [vmem:[#allocation28_spill] sm:$0xff]  ;;  %2697 = vrcp.f32 %v4992_v56  ;;  %v4993_v18 = vld [vmem:[#allocation34_spill] sm:$0xff] }
 0x633   : > { %2022 = vst.msk [vmem:[#allocation2 + $0x10] sm:$0xff] %vm4976_vm2, %v2006_v17  ;;  %vm1867_vm4 = vcmp.eq.s32.totalorder %v3016_v48, %v1739_v57  ;;  %v1766_v4 = vcvt.f32.s32 %v1765_v53  ;;  %v1724_v27 = vadd.s32 %v1723_v35, %v1721_v49  ;;  %v1523_v35 = vadd.f32 %v4989_v44, %v4988_v9  ;;  %v4990_v17 = vld [vmem:[#allocation24_spill] sm:$0xff]  ;;  %vm5005_vm2 = vmmov %vm4998_vm0 }
 0x634   : > { %v2009_v2 = vmul.f32 %v2680_v42, %v1961_v26  ;;  %v1960_v43 = vadd.f32 %v1944_v47, %v4977_v29  ;;  %v2363_v62 = vsel %vm1867_vm4, 1.0, %v4877_v55  ;;  %v2038_v0 = vld [vmem:[#allocation2 + $0x8] sm:$0xff]  ;;  %v4991_v31 = vld [vmem:[#allocation44_spill] sm:$0xff]  ;;  %v1827_v53 = vcvt.f32.s32 %v4474_v5 }
 0x635   : > { %v1947_v63 = vmul.f32 %v4979_v3, %v2363_v62  ;;  %v1769_v37 = vadd.s32 %v1768_v12, %v1766_v4  ;;  %vm1866_vm7 = vcmp.eq.s32.totalorder %v3016_v48, %v1724_v27  ;;  %v1750_v42 = vpop.xlane.xlu0 %1749  ;;  %v1522_v57 = vadd.f32 %v4991_v31, %v4990_v17  ;;  %v4995_v26 = vld [vmem:[#allocation48_spill] sm:$0xff]  ;;  %v4996_v29 = vld [vmem:[#allocation33_spill] sm:$0xff] }
 0x636   : > { %2025 = vst.msk [vmem:[#allocation2 + $0x28] sm:$0xff] %vm4980_vm6, %v2009_v2  ;;  %v2008_v46 = vmul.f32 %v2682_v38, %v1960_v43  ;;  %v2037_v50 = vld [vmem:[#allocation2] sm:$0xff]  ;;  %v2362_v52 = vsel %vm1866_vm7, 1.0, %v4877_v55  ;;  %v1751_v19 = vcvt.f32.s32 %v1750_v42  ;;  %v4986_v38 = vld [vmem:[#allocation29_spill] sm:$0xff]  ;;  %2699 = vrcp.f32 %v4404_v16  ;;  %vm5007_vm6 = vmmov %vm4998_vm0 }
 0x637   : > { %v1963_v58 = vadd.f32 %v1947_v63, %v4981_v7  ;;  %vm1869_vm8 = vcmp.eq.s32.totalorder %v3016_v48, %v1769_v37  ;;  %v1946_v30 = vmul.f32 %v4986_v38, %v2362_v52  ;;  %v2490_v34 = vpack.c.bf16 %v2038_v0, %v2037_v50  ;;  %v5000_v0 = vld [vmem:[#allocation38_spill] sm:$0xff] }
 0x638   : > { %2024 = vst.msk [vmem:[#allocation2 + $0x20] sm:$0xff] %vm4985_vm11, %v2008_v46  ;;  %v2365_v23 = vsel %vm1869_vm8, 1.0, %v4877_v55  ;;  %v1795_v60 = vpop.xlane.xlu1 %1794  ;;  %v1754_v45 = vadd.s32 %v1753_v1, %v1751_v19  ;;  %v2040_v27 = vld [vmem:[#allocation2 + $0x18] sm:$0xff]  ;;  %v1987_v13 = vadd.f32 %v4541_v10, %v1523_v35  ;;  %v1812_v3 = vcvt.f32.s32 %v4479_v59  ;;  %v2696_v63 = vpop.eup %2695  ;;  %vm5012_vm11 = vmmov %vm4998_vm0 }
 0x639   : > { %v2011_v21 = vmul.f32 %v4525_v33, %v1963_v58  ;;  %v1949_v11 = vmul.f32 %v4987_v41, %v2365_v23  ;;  %v1796_v36 = vcvt.f32.s32 %v1795_v60  ;;  %v1962_v39 = vadd.f32 %v1946_v30, %v4993_v18  ;;  %2492 = vmatpush3.bf16.xpose.msk.msra.mxu1 %vm4567_vm10, %v2490_v34  ;;  %v5001_v58 = vld [vmem:[#allocation17_spill] sm:$0xff] }
 0x63a   : > { %v1783_v33 = vshll.u32 %v1782_v8, 16  ;;  %vm1868_vm13 = vcmp.eq.s32.totalorder %v3016_v48, %v1754_v45  ;;  %2493 = vmatprep.subr.bf16.mxu1 %v2788_v28  ;;  %v2039_v62 = vld [vmem:[#allocation2 + $0x10] sm:$0xff]  ;;  %2701 = vrcp.f32 %v4410_v15  ;;  %v1857_v16 = vcvt.f32.s32 %v4484_v32 }
 0x63b   : > { %2027 = vst.msk [vmem:[#allocation2 + $0x38] sm:$0xff] %vm4994_vm12, %v2011_v21  ;;  %v1965_v24 = vadd.f32 %v1949_v11, %v4995_v26  ;;  %v1799_v47 = vadd.s32 %v1798_v40, %v1796_v36  ;;  %v1780_v49 = vpop.xlane.xlu0 %1779  ;;  %v2010_v12 = vmul.f32 %v4528_v61, %v1962_v39  ;;  %v2364_v14 = vsel %vm1868_vm13, 1.0, %v4877_v55  ;;  %v5002_v40 = vld [vmem:[#allocation40_spill] sm:$0xff]  ;;  %v5004_v11 = vld [vmem:[#allocation18_spill] sm:$0xff]  ;;  %vm5014_vm12 = vmmov %vm4998_vm0 }
 0x63c   : > { %v1781_v4 = vcvt.f32.s32 %v1780_v49  ;;  %v1948_v43 = vmul.f32 %v4996_v29, %v2364_v14  ;;  %v1828_v46 = vshll.u32 %v1827_v53, 16  ;;  %v2494_v42 = vpack.c.bf16 %v2040_v27, %v2039_v62  ;;  %v2698_v41 = vpop.eup %2697  ;;  %vm5015_vm13 = vmmov %vm4998_vm0 }
 0x63d   : > { %v2013_v2 = vmul.f32 %v4534_v6, %v1965_v24  ;;  %vm1871_vm14 = vcmp.eq.s32.totalorder %v3016_v48, %v1799_v47  ;;  %2026 = vst.msk [vmem:[#allocation2 + $0x30] sm:$0xff] %vm4997_vm15, %v2010_v12  ;;  %v4999_v6 = vld [vmem:[#allocation36_spill] sm:$0xff]  ;;  %v1986_v50 = vadd.f32 %v4576_v51, %v1522_v57  ;;  %v1813_v19 = vshll.u32 %v1812_v3, 16  ;;  %v2042_v17 = vld [vmem:[#allocation2 + $0x28] sm:$0xff]  ;;  %v5006_v57 = vld [vmem:[#allocation39_spill] sm:$0xff] }
 0x63e   : > { %v2367_v5 = vsel %vm1871_vm14, 1.0, %v4877_v55  ;;  %v1784_v61 = vadd.s32 %v1783_v33, %v1781_v4  ;;  %v1964_v37 = vadd.f32 %v1948_v43, %v4999_v6  ;;  %v1825_v8 = vpop.xlane.xlu1 %1824  ;;  %2703 = vrcp.f32 %v1987_v13  ;;  %v5008_v47 = vld [vmem:[#allocation19_spill] sm:$0xff]  ;;  %v5009_v43 = vld [vmem:[#allocation20_spill] sm:$0xff]  ;;  %v5011_v13 = vld [vmem:[#allocation21_spill] sm:$0xff] }
 0x63f   : > { %2029 = vst.msk [vmem:[#allocation2 + $0x48] sm:$0xff] %vm4998_vm0, %v2013_v2  ;;  %v1951_v1 = vmul.f32 %v5000_v0, %v2367_v5  ;;  %v1826_v59 = vcvt.f32.s32 %v1825_v8  ;;  %v1810_v52 = vpop.xlane.xlu0 %1809  ;;  %v1858_v60 = vshll.u32 %v1857_v16, 16  ;;  %v1842_v34 = vcvt.f32.s32 %v4488_v54  ;;  %v2041_v54 = vld [vmem:[#allocation2 + $0x20] sm:$0xff]  ;;  %v5013_v0 = vld [vmem:[#allocation23_spill] sm:$0xff]  ;;  %vm5016_vm14 = vmmov %vm4998_vm0 }
 0x640   : > { %vm1870_vm1 = vcmp.eq.s32.totalorder %v3016_v48, %v1784_v61  ;;  %v2012_v7 = vmul.f32 %v4547_v25, %v1964_v37  ;;  %v1811_v23 = vcvt.f32.s32 %v1810_v52  ;;  %2705 = vrcp.f32 %v1986_v50  ;;  %v2700_v39 = vpop.eup %2699 }
 0x641   : > { %v1967_v15 = vadd.f32 %v1951_v1, %v5001_v58  ;;  %v2366_v32 = vsel %vm1870_vm1, 1.0, %v4877_v55  ;;  %v1829_v30 = vadd.s32 %v1828_v46, %v1826_v59  ;;  %2496 = vmatpush3.bf16.xpose.msk.msra.mxu1 %vm4567_vm10, %v2494_v42  ;;  %v1843_v33 = vshll.u32 %v1842_v34, 16 }
 0x642   : > { %v1950_v38 = vmul.f32 %v5002_v40, %v2366_v32  ;;  %2028 = vst.msk [vmem:[#allocation2 + $0x40] sm:$0xff] %vm5003_vm3, %v2012_v7  ;;  %v1855_v21 = vpop.xlane.xlu1 %1854  ;;  %2497 = vmatprep.subr.bf16.mxu1 %v2788_v28  ;;  %v1814_v36 = vadd.s32 %v1813_v19, %v1811_v23  ;;  %v2498_v12 = vpack.c.bf16 %v2042_v17, %v2041_v54  ;;  %v2044_v6 = vld [vmem:[#allocation2 + $0x38] sm:$0xff]  ;;  %v2036_v40 = vld [vmem:[%s252_s11] sm:$0xff] }
 0x643   : > { %v2015_v25 = vmul.f32 %v2696_v63, %v1967_v15  ;;  %vm1873_vm5 = vcmp.eq.s32.totalorder %v3016_v48, %v1829_v30  ;;  %v1856_v9 = vcvt.f32.s32 %v1855_v21  ;;  %v1840_v35 = vpop.xlane.xlu0 %1839 }
 0x644   : > { %v1966_v45 = vadd.f32 %v1950_v38, %v5004_v11  ;;  %v2369_v44 = vsel %vm1873_vm5, 1.0, %v4877_v55  ;;  %vm1872_vm4 = vcmp.eq.s32.totalorder %v3016_v48, %v1814_v36  ;;  %v1841_v24 = vcvt.f32.s32 %v1840_v35  ;;  %v2702_v14 = vpop.eup %2701  ;;  %v2043_v16 = vld [vmem:[#allocation2 + $0x30] sm:$0xff] }
 0x645   : > { %2031 = vst.msk [vmem:[#allocation2 + $0x58] sm:$0xff] %vm5005_vm2, %v2015_v25  ;;  %v1953_v56 = vmul.f32 %v5006_v57, %v2369_v44  ;;  %v1859_v18 = vadd.s32 %v1858_v60, %v1856_v9  ;;  %v2368_v26 = vsel %vm1872_vm4, 1.0, %v4877_v55  ;;  %v2502_v1 = vpack.c.bf16 %v2044_v6, %v2043_v16 }
 0x646   : > { %v2014_v31 = vmul.f32 %v2698_v41, %v1966_v45  ;;  %v1952_v53 = vmul.f32 %v4406_v22, %v2368_v26  ;;  %v1844_v2 = vadd.s32 %v1843_v33, %v1841_v24 }
 0x647   : > { %v1969_v49 = vadd.f32 %v1953_v56, %v5008_v47  ;;  %vm1875_vm7 = vcmp.eq.s32.totalorder %v3016_v48, %v1859_v18 }
 0x648   : > { %2030 = vst.msk [vmem:[#allocation2 + $0x50] sm:$0xff] %vm5007_vm6, %v2014_v31  ;;  %v2371_v4 = vsel %vm1875_vm7, 1.0, %v4877_v55  ;;  %v1968_v62 = vadd.f32 %v1952_v53, %v5009_v43  ;;  %vm1874_vm8 = vcmp.eq.s32.totalorder %v3016_v48, %v1844_v2  ;;  %v2704_v61 = vpop.eup %2703 }
 0x649   : > { %v2017_v29 = vmul.f32 %v2700_v39, %v1969_v49  ;;  %v1955_v27 = vmul.f32 %v4541_v10, %v2371_v4  ;;  %2500 = vmatpush3.bf16.xpose.msk.msra.mxu1 %vm4567_vm10, %v2498_v12  ;;  %v2370_v5 = vsel %vm1874_vm8, 1.0, %v4877_v55  ;;  %v2045_v55 = vld [vmem:[#allocation2 + $0x40] sm:$0xff] }
 0x64a   : > { %2501 = vmatprep.subr.bf16.mxu1 %v2788_v28  ;;  %v2016_v22 = vmul.f32 %v2702_v14, %v1968_v62  ;;  %v1954_v63 = vmul.f32 %v4576_v51, %v2370_v5  ;;  %v2706_v37 = vpop.eup %2705  ;;  %v2046_v51 = vld [vmem:[#allocation2 + $0x48] sm:$0xff] }
 0x64b   : > { %2033 = vst.msk [vmem:[#allocation2 + $0x68] sm:$0xff] %vm5010_vm9, %v2017_v29  ;;  %v1971_v3 = vadd.f32 %v1955_v27, %v5011_v13  ;;  %v2506_v46 = vpack.c.bf16 %v2046_v51, %v2045_v55 }
 0x64c   : > { %2032 = vst.msk [vmem:[#allocation2 + $0x60] sm:$0xff] %vm5012_vm11, %v2016_v22  ;;  %v1970_v48 = vadd.f32 %v1954_v63, %v5013_v0  ;;  %v2048_v42 = vld [vmem:[#allocation2 + $0x58] sm:$0xff] }
 0x64d   : > { %v2019_v10 = vmul.f32 %v2704_v61, %v1971_v3 }
 0x64e   : > { %v2018_v8 = vmul.f32 %v2706_v37, %v1970_v48 }
 0x64f   : > { %2035 = vst.msk [vmem:[#allocation2 + $0x78] sm:$0xff] %vm5014_vm12, %v2019_v10  ;;  %v2047_v59 = vld [vmem:[#allocation2 + $0x50] sm:$0xff] }
 0x650   : > { %2034 = vst.msk [vmem:[#allocation2 + $0x70] sm:$0xff] %vm5015_vm13, %v2018_v8  ;;  %v2510_v50 = vpack.c.bf16 %v2048_v42, %v2047_v59 }
 0x651   : > { %2504 = vmatpush3.bf16.xpose.msk.msra.mxu1 %vm4567_vm10, %v2502_v1 }
 0x652   : > { %2505 = vmatprep.subr.bf16.mxu1 %v2788_v28  ;;  %v2050_v58 = vld [vmem:[#allocation2 + $0x68] sm:$0xff] }
 0x653   : > { %v2049_v7 = vld [vmem:[#allocation2 + $0x60] sm:$0xff] }
 0x654   : > { %v2514_v15 = vpack.c.bf16 %v2050_v58, %v2049_v7 }
 0x656   : > { %v2052_v52 = vld [vmem:[#allocation2 + $0x78] sm:$0xff] }
 0x657   : > { %v2051_v32 = vld [vmem:[#allocation2 + $0x70] sm:$0xff] }
 0x658   : > { %v2518_v19 = vpack.c.bf16 %v2052_v52, %v2051_v32 }
 0x659   : > { %2508 = vmatpush3.bf16.xpose.msk.msra.mxu1 %vm4567_vm10, %v2506_v46 }
 0x65a   : > { %2509 = vmatprep.subr.bf16.mxu1 %v2788_v28 }
 0x661   : > { %2512 = vmatpush3.bf16.xpose.msk.msra.mxu1 %vm4567_vm10, %v2510_v50 }
 0x662   : > { %2513 = vmatprep.subr.bf16.mxu1 %v2788_v28 }
 0x669   : > { %2516 = vmatpush3.bf16.xpose.msk.msra.mxu1 %vm4567_vm10, %v2514_v15 }
 0x66a   : > { %2517 = vmatprep.subr.bf16.mxu1 %v2788_v28 }
 0x671   : > { %2520 = vmatpush3.bf16.xpose.msk.msra.mxu1 %vm4567_vm10, %v2518_v19 }
 0x678   : > { %2487 = vmatmul.mubr.msk.f32.vlgmr.msra.gmra.mrb[0].mxu1 %vm5016_vm14, %v2036_v40 }
 0x74b   : > { %v2171_v28 = vpop.f32.mrb[0].mxu1 }
 0x74c   : > { %2175 = vst [vmem:[%s231_s21] sm:$0xff] %v2171_v28  ;;  %v2488_v20 = vpop.f32.mrb[1].mxu1 }
 0x74d   : > { %2720 = shalt.err (!%p2717_p5)
}
 0x74e   : > { %s2721_s7 = scalar_lea.hbm %s4669_s29, 128  ;;  %s2725_s10 = scalar_lea.hbm %s4717_s3, 256 }
 0x74f   : > { %p2722_p6 = scmp.ne.s32.totalorder %s4669_s29, %s2721_s7  ;;  %p2726_p10 = scmp.lt.u32.totalorder %s4669_s29, %s4717_s3 }
 0x750   : > { %p2727_p11 = scmp.lt.u32.totalorder %s2725_s10, %s2721_s7  ;;  %p2729_p13 = scmp.lt.u32.totalorder %s2721_s7, %s4669_s29 }
 0x751   : > { %p2723_p7 = pnand %p2722_p6, %p2851_p4 }
 0x752   : > { %p2728_p12 = por %p2727_p11, %p2726_p10 }
 0x753   : > { %p2724_p9 = pneg %p2723_p7 }
 0x754   : > { %p2730_p0 = por %p2729_p13, %p2728_p12 }
 0x756   : > { %p2731_p1 = pnand %p2730_p0, %p2724_p9 }
 0x758   : > { %2734 = shalt.err (!%p2731_p1)
}
 0x759   : > { %2521 = dma.vmem_to_hbm [thread:$0]  (%p2851_p4), %s4664_s23, 128, %s4669_s29, %s2177_s30  }
 0x75a PF: > { %p2527_p2 = scmp.ge.s32.totalorder %s2785_s17, 2  ;;  %s2204_s19 = sand.u32 1, %s2765_s12  }
 0x75b   : > { %s2205_s21 = scalar_lea.sflag [#allocation4], %s2204_s19 }
 0x75c   : > { %p2524_p3 = pnand %p2527_p2, %p2858_p8 }
 0x75e   : > { %2760 = dma.done.wait (!%p2524_p3), %s2205_s21, 128  }
 0x75f   : > { %2762 = vsyncadd (!%p2524_p3), %s2205_s21, 4294967168  ;;  %s16_s17 = sadd.s32 1, %s2785_s17   ;;  %s5017_s12 = smov %s2769_s13 }
 0x760   : > { %p13_p5 = scmp.ge.s32.totalorder %s16_s17, 4   ;;  %s5018_s13 = smov %s2773_s14 }
 0x761   : > { %s5019_s14 = smov %s2864_s25  ;;  %s5020_s15 = smov %s2781_s16 }
 0x762   : > { %s5021_s16 = smov %s5023_s20  ;;  %15 = sbr.rel (!%p13_p5) target bundleno = 4 (0x4), region = 77 }
 0x769   :  { %2210 = vsyncpa [#allocation4], 1 }
 0x76a   :  { %2212 = vsyncpa [#allocation4 + $0x1], 1 }

</bundles_post_ra>
